<compile_context>
chip_gen: v7x
topology: tpu7x:2x2x1
jax: 0.10.0
libtpu: 0.0.40
codegen_flags: <defaults>
</compile_context>

<pallas_src>
import functools

import jax
import jax.numpy as jnp
from jax.experimental import pallas as pl
from jax.experimental.pallas import tpu as pltpu


# ---------------------------------------------------------------------------
# Fused Pallas kernel: conv-relu-conv['mid']-relu-conv-relu-conv['last'] (+sigmoid)
# ---------------------------------------------------------------------------
def _fused_encoder_kernel(mask_ref, x_ref,
                          w0_ref, b0_ref, w2_ref, b2_ref,
                          w4_ref, b4_ref, w6_ref, b6_ref,
                          out_ref,
                          *, shifts, c_mid, apply_sigmoid):
    f32 = jnp.float32

    def conv3x3(act, w_ref, b_ref):
        # act: (Cin, L) with the batch folded into L (whole images contiguous).
        # 9-tap accumulation: each tap is a lane roll (XLU) + precomputed
        # boundary mask (VPU) + tiny (Cout, Cin) @ (Cin, L) MXU push into an
        # f32 accumulator. No im2col patches tensor is ever materialized.
        acc = jnp.dot(w_ref[4], act, preferred_element_type=f32)   # center tap
        for t in range(9):
            if t == 4:
                continue
            rolled = pltpu.roll(act, shift=shifts[t], axis=1)
            masked = rolled * mask_ref[pl.ds(t, 1), :]              # (1, L) bcast
            acc = acc + jnp.dot(w_ref[t], masked, preferred_element_type=f32)
        return acc + b_ref[...]                                     # (Cout, 1) bcast

    x = x_ref[...].astype(f32)                               # (Cin, L)
    h = jnp.maximum(conv3x3(x, w0_ref, b0_ref), 0.0)         # layers 0, 1
    mid = conv3x3(h, w2_ref, b2_ref)                         # layer 2 -> 'mid'
    h = jnp.maximum(mid, 0.0)                                # layer 3
    h = jnp.maximum(conv3x3(h, w4_ref, b4_ref), 0.0)         # layers 4, 5
    last = conv3x3(h, w6_ref, b6_ref)                        # layer 6 -> 'last'

    if apply_sigmoid:
        mid = jax.nn.sigmoid(mid)
        last = jax.nn.sigmoid(last)

    c_last = last.shape[0]
    # c_mid is a multiple of 8 here, so both stores are sublane-aligned.
    out_ref[pl.ds(0, c_mid), :] = mid.astype(out_ref.dtype)
    out_ref[pl.ds(c_mid, c_last), :] = last.astype(out_ref.dtype)


# ---------------------------------------------------------------------------
# Wrapper
# ---------------------------------------------------------------------------
@functools.partial(jax.jit, static_argnames=("sigmoid",))
def component_encoder_forward(x_nchw, params, *, sigmoid=False):
    """x_nchw: (B, Cin, H, W) f32; params: dict conv0/2/4/6 -> (w HWIO, b)."""
    B, Cin, H, W = x_nchw.shape
    HW = H * W

    # Fold batch into lanes; keep a 2-way parallel grid over whole-image lane
    # chunks so both v7x TensorCores are busy (negligible cost on v5e/v6e).
    n_blocks = 2 if (B >= 2 and B % 2 == 0) else 1
    img_per_blk = B // n_blocks
    L = img_per_blk * HW                                  # lanes per grid step

    def prep(w, b):
        # HWIO (3,3,Cin,Cout) -> tap-major (9, Cout, Cin); bias -> (Cout, 1).
        cin, cout = w.shape[2], w.shape[3]
        w9 = jnp.transpose(w.reshape(9, cin, cout), (0, 2, 1))
        return w9, b.reshape(cout, 1)

    w0, b0 = prep(*params["conv0"])
    w2, b2 = prep(*params["conv2"])
    w4, b4 = prep(*params["conv4"])
    w6, b6 = prep(*params["conv6"])
    c_mid, c_last = w2.shape[1], w6.shape[1]
    c_out = c_mid + c_last

    # (Cin, B*HW): one XLA transpose, whole images contiguous along lanes.
    x_flat = jnp.transpose(x_nchw, (1, 0, 2, 3)).reshape(Cin, B * HW)

    # Precompute the 9 tap boundary masks ONCE (hoisted out of the kernel).
    # Masks use the per-image position (lane % HW), so roll wraps across image
    # boundaries inside a chunk are always zeroed.
    pos = jnp.arange(HW)
    hh, ww = pos // W, pos % W
    mask_rows, shifts = [], []
    for dh in (-1, 0, 1):
        for dw in (-1, 0, 1):
            valid = ((hh + dh >= 0) & (hh + dh < H) &
                     (ww + dw >= 0) & (ww + dw < W))
            mask_rows.append(valid)
            shifts.append((-(dh * W + dw)) % L)       # out[p] = act[p + dh*W + dw]
    mask = jnp.stack(mask_rows).astype(jnp.float32)            # (9, HW)
    mask = jnp.tile(mask, (1, img_per_blk))                    # (9, L)

    def full_spec(arr):
        nd = arr.ndim
        return pl.BlockSpec(arr.shape, lambda i, _nd=nd: (0,) * _nd)

    grid_spec = pltpu.PrefetchScalarGridSpec(
        num_scalar_prefetch=0,
        grid=(n_blocks,),
        in_specs=[
            full_spec(mask),
            pl.BlockSpec((Cin, L), lambda i: (0, i)),
            full_spec(w0), full_spec(b0),
            full_spec(w2), full_spec(b2),
            full_spec(w4), full_spec(b4),
            full_spec(w6), full_spec(b6),
        ],
        out_specs=pl.BlockSpec((c_out, L), lambda i: (0, i)),
    )

    out = pl.pallas_call(
        functools.partial(_fused_encoder_kernel, shifts=tuple(shifts),
                          c_mid=c_mid, apply_sigmoid=sigmoid),
        out_shape=jax.ShapeDtypeStruct((c_out, B * HW), x_nchw.dtype),
        grid_spec=grid_spec,
        compiler_params=pltpu.CompilerParams(
            dimension_semantics=("parallel",)),
    )(mask, x_flat, w0, b0, w2, b2, w4, b4, w6, b6)

    def to_nchw(t):                    # (C, B*HW) -> (B, C, H, W)
        c = t.shape[0]
        return jnp.transpose(t.reshape(c, B, H, W), (1, 0, 2, 3))

    return {"mid": to_nchw(out[:c_mid]),
            "last": to_nchw(out[c_mid:])}


# ---------------------------------------------------------------------------
# ComponentEncoder (same forward semantics as the PyTorch module)
# ---------------------------------------------------------------------------
class ComponentEncoder:
    """Fused Pallas implementation of ComponentEncoder.forward for the
    7-layer conv/ReLU body: captures layer-2 output as 'mid', layer-6 output
    as 'last', and optionally applies sigmoid to the captured features."""

    def __init__(self, conv_params, final_shape, sigmoid=False):
        self.params = conv_params
        self.final_shape = final_shape      # kept for parity; unused by forward
        self.sigmoid = sigmoid

    def __call__(self, x_nchw):
        return component_encoder_forward(x_nchw, self.params,
                                         sigmoid=self.sigmoid)


# ---------------------------------------------------------------------------
# Main
# ---------------------------------------------------------------------------
if __name__ == "__main__":
    key = jax.random.PRNGKey(0)
    kx, k0, k2, k4, k6 = jax.random.split(key, 5)

    B, Cin, H, W = 2, 4, 16, 16

    def init_conv(k, cin, cout):
        kw_, kb_ = jax.random.split(k)
        w = jax.random.normal(kw_, (3, 3, cin, cout), jnp.float32)
        w = w * (1.0 / jnp.sqrt(9.0 * cin))
        b = jax.random.normal(kb_, (cout,), jnp.float32) * 0.01
        return w, b

    params = {
        "conv0": init_conv(k0, 4, 8),
        "conv2": init_conv(k2, 8, 8),
        "conv4": init_conv(k4, 8, 16),
        "conv6": init_conv(k6, 16, 16),
    }

    x = jax.random.normal(kx, (B, Cin, H, W), jnp.float32)   # NCHW input

    encoder = ComponentEncoder(params, final_shape=(16, 16, 16), sigmoid=True)
    feats = jax.block_until_ready(encoder(x))

    # ---- pure-JAX reference with identical structure ----
    def conv3x3_ref(t, w, b):
        out = jax.lax.conv_general_dilated(
            t, w, window_strides=(1, 1), padding="SAME",
            dimension_numbers=("NHWC", "HWIO", "NHWC"),
            precision=jax.lax.Precision.HIGHEST)
        return out + b[None, None, None, :]

    w0, b0 = params["conv0"]; w2, b2 = params["conv2"]
    w4, b4 = params["conv4"]; w6, b6 = params["conv6"]
    ref_body = [
        lambda t: conv3x3_ref(t, w0, b0),
        lambda t: jnp.maximum(t, 0.0),
        lambda t: conv3x3_ref(t, w2, b2),
        lambda t: jnp.maximum(t, 0.0),
        lambda t: conv3x3_ref(t, w4, b4),
        lambda t: jnp.maximum(t, 0.0),
        lambda t: conv3x3_ref(t, w6, b6),
    ]
    h = jnp.transpose(x, (0, 2, 3, 1))           # NCHW -> NHWC for reference
    ref_feats = {}
    for i, layer in enumerate(ref_body):
        h = layer(h)
        if i == 2:
            ref_feats["mid"] = h
        if i == 6:
            ref_feats["last"] = h
    ref_feats = {k: jnp.transpose(jax.nn.sigmoid(v), (0, 3, 1, 2))
                 for k, v in ref_feats.items()}  # back to NCHW

    for name in ("mid", "last"):
        assert feats[name].shape == ref_feats[name].shape, (
            name, feats[name].shape, ref_feats[name].shape)
        err = jnp.max(jnp.abs(feats[name] - ref_feats[name]))
        assert err < 1e-2, f"mismatch on {name}: max abs err = {err}"

    print("KERNEL_OK")
</pallas_src>

<mosaic_0001>
module attributes {stable_mosaic.version = 11 : i64} {
  func.func @_fused_encoder_kernel(%arg0: i32, %arg1: memref<9x256xf32, #tpu.memory_space<vmem>>, %arg2: memref<4x256xf32, #tpu.memory_space<vmem>>, %arg3: memref<9x8x4xf32, #tpu.memory_space<vmem>>, %arg4: memref<8x1xf32, #tpu.memory_space<vmem>>, %arg5: memref<9x8x8xf32, #tpu.memory_space<vmem>>, %arg6: memref<8x1xf32, #tpu.memory_space<vmem>>, %arg7: memref<9x16x8xf32, #tpu.memory_space<vmem>>, %arg8: memref<16x1xf32, #tpu.memory_space<vmem>>, %arg9: memref<9x16x16xf32, #tpu.memory_space<vmem>>, %arg10: memref<16x1xf32, #tpu.memory_space<vmem>>, %arg11: memref<24x256xf32, #tpu.memory_space<vmem>>) attributes {dimension_semantics = [#tpu.dimension_semantics<parallel>], iteration_bounds = array<i64: 2>, scalar_prefetch = 0 : i64, scratch_operands = 0 : i64, tpu.core_type = #tpu.core_type<tc>, window_params = [{pipeline_mode = #tpu.pipeline_mode<synchronous>, transform_indices = @transform_0, window_bounds = array<i64: 9, 256>}, {transform_indices = @transform_1, window_bounds = array<i64: 4, 256>}, {pipeline_mode = #tpu.pipeline_mode<synchronous>, transform_indices = @transform_2, window_bounds = array<i64: 9, 8, 4>}, {pipeline_mode = #tpu.pipeline_mode<synchronous>, transform_indices = @transform_3, window_bounds = array<i64: 8, 1>}, {pipeline_mode = #tpu.pipeline_mode<synchronous>, transform_indices = @transform_4, window_bounds = array<i64: 9, 8, 8>}, {pipeline_mode = #tpu.pipeline_mode<synchronous>, transform_indices = @transform_5, window_bounds = array<i64: 8, 1>}, {pipeline_mode = #tpu.pipeline_mode<synchronous>, transform_indices = @transform_6, window_bounds = array<i64: 9, 16, 8>}, {pipeline_mode = #tpu.pipeline_mode<synchronous>, transform_indices = @transform_7, window_bounds = array<i64: 16, 1>}, {pipeline_mode = #tpu.pipeline_mode<synchronous>, transform_indices = @transform_8, window_bounds = array<i64: 9, 16, 16>}, {pipeline_mode = #tpu.pipeline_mode<synchronous>, transform_indices = @transform_9, window_bounds = array<i64: 16, 1>}, {transform_indices = @transform_10, window_bounds = array<i64: 24, 256>}]} {
    %c0 = arith.constant 0 : index
    %c0_0 = arith.constant 0 : index
    %0 = vector.load %arg2[%c0, %c0_0] : memref<4x256xf32, #tpu.memory_space<vmem>>, vector<4x256xf32>
    %c4 = arith.constant 4 : index
    %c0_1 = arith.constant 0 : index
    %c0_2 = arith.constant 0 : index
    %1 = vector.load %arg3[%c4, %c0_1, %c0_2] : memref<9x8x4xf32, #tpu.memory_space<vmem>>, vector<1x8x4xf32>
    %2 = vector.shape_cast %1 : vector<1x8x4xf32> to vector<8x4xf32>
    %cst = arith.constant dense<0.000000e+00> : vector<8x256xf32>
    %3 = tpu.matmul %2, %0, %cst {dimension_numbers = #tpu.dot_dimension_numbers<[1], [0], [0], [1], [0, 0, 1, 1], [], []>} : vector<8x4xf32>, vector<4x256xf32>, vector<8x256xf32> -> vector<8x256xf32>
    %c17_i32 = arith.constant 17 : i32
    %4 = tpu.dynamic_rotate %0 by %c17_i32 dim 1 : vector<4x256xf32>, i32 -> vector<4x256xf32>
    %c0_3 = arith.constant 0 : index
    %c0_4 = arith.constant 0 : index
    %5 = vector.load %arg1[%c0_3, %c0_4] : memref<9x256xf32, #tpu.memory_space<vmem>>, vector<1x256xf32>
    %6 = vector.broadcast %5 : vector<1x256xf32> to vector<4x256xf32>
    %7 = arith.mulf %4, %6 : vector<4x256xf32>
    %c0_5 = arith.constant 0 : index
    %c0_6 = arith.constant 0 : index
    %c0_7 = arith.constant 0 : index
    %8 = vector.load %arg3[%c0_5, %c0_6, %c0_7] : memref<9x8x4xf32, #tpu.memory_space<vmem>>, vector<1x8x4xf32>
    %9 = vector.shape_cast %8 : vector<1x8x4xf32> to vector<8x4xf32>
    %cst_8 = arith.constant dense<0.000000e+00> : vector<8x256xf32>
    %10 = tpu.matmul %9, %7, %cst_8 {dimension_numbers = #tpu.dot_dimension_numbers<[1], [0], [0], [1], [0, 0, 1, 1], [], []>} : vector<8x4xf32>, vector<4x256xf32>, vector<8x256xf32> -> vector<8x256xf32>
    %11 = arith.addf %3, %10 : vector<8x256xf32>
    %c16_i32 = arith.constant 16 : i32
    %12 = tpu.dynamic_rotate %0 by %c16_i32 dim 1 : vector<4x256xf32>, i32 -> vector<4x256xf32>
    %c1 = arith.constant 1 : index
    %c0_9 = arith.constant 0 : index
    %13 = vector.load %arg1[%c1, %c0_9] : memref<9x256xf32, #tpu.memory_space<vmem>>, vector<1x256xf32>
    %14 = vector.broadcast %13 : vector<1x256xf32> to vector<4x256xf32>
    %15 = arith.mulf %12, %14 : vector<4x256xf32>
    %c1_10 = arith.constant 1 : index
    %c0_11 = arith.constant 0 : index
    %c0_12 = arith.constant 0 : index
    %16 = vector.load %arg3[%c1_10, %c0_11, %c0_12] : memref<9x8x4xf32, #tpu.memory_space<vmem>>, vector<1x8x4xf32>
    %17 = vector.shape_cast %16 : vector<1x8x4xf32> to vector<8x4xf32>
    %cst_13 = arith.constant dense<0.000000e+00> : vector<8x256xf32>
    %18 = tpu.matmul %17, %15, %cst_13 {dimension_numbers = #tpu.dot_dimension_numbers<[1], [0], [0], [1], [0, 0, 1, 1], [], []>} : vector<8x4xf32>, vector<4x256xf32>, vector<8x256xf32> -> vector<8x256xf32>
    %19 = arith.addf %11, %18 : vector<8x256xf32>
    %c15_i32 = arith.constant 15 : i32
    %20 = tpu.dynamic_rotate %0 by %c15_i32 dim 1 : vector<4x256xf32>, i32 -> vector<4x256xf32>
    %c2 = arith.constant 2 : index
    %c0_14 = arith.constant 0 : index
    %21 = vector.load %arg1[%c2, %c0_14] : memref<9x256xf32, #tpu.memory_space<vmem>>, vector<1x256xf32>
    %22 = vector.broadcast %21 : vector<1x256xf32> to vector<4x256xf32>
    %23 = arith.mulf %20, %22 : vector<4x256xf32>
    %c2_15 = arith.constant 2 : index
    %c0_16 = arith.constant 0 : index
    %c0_17 = arith.constant 0 : index
    %24 = vector.load %arg3[%c2_15, %c0_16, %c0_17] : memref<9x8x4xf32, #tpu.memory_space<vmem>>, vector<1x8x4xf32>
    %25 = vector.shape_cast %24 : vector<1x8x4xf32> to vector<8x4xf32>
    %cst_18 = arith.constant dense<0.000000e+00> : vector<8x256xf32>
    %26 = tpu.matmul %25, %23, %cst_18 {dimension_numbers = #tpu.dot_dimension_numbers<[1], [0], [0], [1], [0, 0, 1, 1], [], []>} : vector<8x4xf32>, vector<4x256xf32>, vector<8x256xf32> -> vector<8x256xf32>
    %27 = arith.addf %19, %26 : vector<8x256xf32>
    %c1_i32 = arith.constant 1 : i32
    %28 = tpu.dynamic_rotate %0 by %c1_i32 dim 1 : vector<4x256xf32>, i32 -> vector<4x256xf32>
    %c3 = arith.constant 3 : index
    %c0_19 = arith.constant 0 : index
    %29 = vector.load %arg1[%c3, %c0_19] : memref<9x256xf32, #tpu.memory_space<vmem>>, vector<1x256xf32>
    %30 = vector.broadcast %29 : vector<1x256xf32> to vector<4x256xf32>
    %31 = arith.mulf %28, %30 : vector<4x256xf32>
    %c3_20 = arith.constant 3 : index
    %c0_21 = arith.constant 0 : index
    %c0_22 = arith.constant 0 : index
    %32 = vector.load %arg3[%c3_20, %c0_21, %c0_22] : memref<9x8x4xf32, #tpu.memory_space<vmem>>, vector<1x8x4xf32>
    %33 = vector.shape_cast %32 : vector<1x8x4xf32> to vector<8x4xf32>
    %cst_23 = arith.constant dense<0.000000e+00> : vector<8x256xf32>
    %34 = tpu.matmul %33, %31, %cst_23 {dimension_numbers = #tpu.dot_dimension_numbers<[1], [0], [0], [1], [0, 0, 1, 1], [], []>} : vector<8x4xf32>, vector<4x256xf32>, vector<8x256xf32> -> vector<8x256xf32>
    %35 = arith.addf %27, %34 : vector<8x256xf32>
    %c255_i32 = arith.constant 255 : i32
    %36 = tpu.dynamic_rotate %0 by %c255_i32 dim 1 : vector<4x256xf32>, i32 -> vector<4x256xf32>
    %c5 = arith.constant 5 : index
    %c0_24 = arith.constant 0 : index
    %37 = vector.load %arg1[%c5, %c0_24] : memref<9x256xf32, #tpu.memory_space<vmem>>, vector<1x256xf32>
    %38 = vector.broadcast %37 : vector<1x256xf32> to vector<4x256xf32>
    %39 = arith.mulf %36, %38 : vector<4x256xf32>
    %c5_25 = arith.constant 5 : index
    %c0_26 = arith.constant 0 : index
    %c0_27 = arith.constant 0 : index
    %40 = vector.load %arg3[%c5_25, %c0_26, %c0_27] : memref<9x8x4xf32, #tpu.memory_space<vmem>>, vector<1x8x4xf32>
    %41 = vector.shape_cast %40 : vector<1x8x4xf32> to vector<8x4xf32>
    %cst_28 = arith.constant dense<0.000000e+00> : vector<8x256xf32>
    %42 = tpu.matmul %41, %39, %cst_28 {dimension_numbers = #tpu.dot_dimension_numbers<[1], [0], [0], [1], [0, 0, 1, 1], [], []>} : vector<8x4xf32>, vector<4x256xf32>, vector<8x256xf32> -> vector<8x256xf32>
    %43 = arith.addf %35, %42 : vector<8x256xf32>
    %c241_i32 = arith.constant 241 : i32
    %44 = tpu.dynamic_rotate %0 by %c241_i32 dim 1 : vector<4x256xf32>, i32 -> vector<4x256xf32>
    %c6 = arith.constant 6 : index
    %c0_29 = arith.constant 0 : index
    %45 = vector.load %arg1[%c6, %c0_29] : memref<9x256xf32, #tpu.memory_space<vmem>>, vector<1x256xf32>
    %46 = vector.broadcast %45 : vector<1x256xf32> to vector<4x256xf32>
    %47 = arith.mulf %44, %46 : vector<4x256xf32>
    %c6_30 = arith.constant 6 : index
    %c0_31 = arith.constant 0 : index
    %c0_32 = arith.constant 0 : index
    %48 = vector.load %arg3[%c6_30, %c0_31, %c0_32] : memref<9x8x4xf32, #tpu.memory_space<vmem>>, vector<1x8x4xf32>
    %49 = vector.shape_cast %48 : vector<1x8x4xf32> to vector<8x4xf32>
    %cst_33 = arith.constant dense<0.000000e+00> : vector<8x256xf32>
    %50 = tpu.matmul %49, %47, %cst_33 {dimension_numbers = #tpu.dot_dimension_numbers<[1], [0], [0], [1], [0, 0, 1, 1], [], []>} : vector<8x4xf32>, vector<4x256xf32>, vector<8x256xf32> -> vector<8x256xf32>
    %51 = arith.addf %43, %50 : vector<8x256xf32>
    %c240_i32 = arith.constant 240 : i32
    %52 = tpu.dynamic_rotate %0 by %c240_i32 dim 1 : vector<4x256xf32>, i32 -> vector<4x256xf32>
    %c7 = arith.constant 7 : index
    %c0_34 = arith.constant 0 : index
    %53 = vector.load %arg1[%c7, %c0_34] : memref<9x256xf32, #tpu.memory_space<vmem>>, vector<1x256xf32>
    %54 = vector.broadcast %53 : vector<1x256xf32> to vector<4x256xf32>
    %55 = arith.mulf %52, %54 : vector<4x256xf32>
    %c7_35 = arith.constant 7 : index
    %c0_36 = arith.constant 0 : index
    %c0_37 = arith.constant 0 : index
    %56 = vector.load %arg3[%c7_35, %c0_36, %c0_37] : memref<9x8x4xf32, #tpu.memory_space<vmem>>, vector<1x8x4xf32>
    %57 = vector.shape_cast %56 : vector<1x8x4xf32> to vector<8x4xf32>
    %cst_38 = arith.constant dense<0.000000e+00> : vector<8x256xf32>
    %58 = tpu.matmul %57, %55, %cst_38 {dimension_numbers = #tpu.dot_dimension_numbers<[1], [0], [0], [1], [0, 0, 1, 1], [], []>} : vector<8x4xf32>, vector<4x256xf32>, vector<8x256xf32> -> vector<8x256xf32>
    %59 = arith.addf %51, %58 : vector<8x256xf32>
    %c239_i32 = arith.constant 239 : i32
    %60 = tpu.dynamic_rotate %0 by %c239_i32 dim 1 : vector<4x256xf32>, i32 -> vector<4x256xf32>
    %c8 = arith.constant 8 : index
    %c0_39 = arith.constant 0 : index
    %61 = vector.load %arg1[%c8, %c0_39] : memref<9x256xf32, #tpu.memory_space<vmem>>, vector<1x256xf32>
    %62 = vector.broadcast %61 : vector<1x256xf32> to vector<4x256xf32>
    %63 = arith.mulf %60, %62 : vector<4x256xf32>
    %c8_40 = arith.constant 8 : index
    %c0_41 = arith.constant 0 : index
    %c0_42 = arith.constant 0 : index
    %64 = vector.load %arg3[%c8_40, %c0_41, %c0_42] : memref<9x8x4xf32, #tpu.memory_space<vmem>>, vector<1x8x4xf32>
    %65 = vector.shape_cast %64 : vector<1x8x4xf32> to vector<8x4xf32>
    %cst_43 = arith.constant dense<0.000000e+00> : vector<8x256xf32>
    %66 = tpu.matmul %65, %63, %cst_43 {dimension_numbers = #tpu.dot_dimension_numbers<[1], [0], [0], [1], [0, 0, 1, 1], [], []>} : vector<8x4xf32>, vector<4x256xf32>, vector<8x256xf32> -> vector<8x256xf32>
    %67 = arith.addf %59, %66 : vector<8x256xf32>
    %c0_44 = arith.constant 0 : index
    %c0_45 = arith.constant 0 : index
    %68 = vector.load %arg4[%c0_44, %c0_45] : memref<8x1xf32, #tpu.memory_space<vmem>>, vector<8x1xf32>
    %69 = vector.broadcast %68 : vector<8x1xf32> to vector<8x256xf32>
    %70 = arith.addf %67, %69 : vector<8x256xf32>
    %cst_46 = arith.constant 0.000000e+00 : f32
    %71 = vector.broadcast %cst_46 : f32 to vector<8x256xf32>
    %72 = arith.maximumf %70, %71 : vector<8x256xf32>
    %c4_47 = arith.constant 4 : index
    %c0_48 = arith.constant 0 : index
    %c0_49 = arith.constant 0 : index
    %73 = vector.load %arg5[%c4_47, %c0_48, %c0_49] : memref<9x8x8xf32, #tpu.memory_space<vmem>>, vector<1x8x8xf32>
    %74 = vector.shape_cast %73 : vector<1x8x8xf32> to vector<8x8xf32>
    %cst_50 = arith.constant dense<0.000000e+00> : vector<8x256xf32>
    %75 = tpu.matmul %74, %72, %cst_50 {dimension_numbers = #tpu.dot_dimension_numbers<[1], [0], [0], [1], [0, 0, 1, 1], [], []>} : vector<8x8xf32>, vector<8x256xf32>, vector<8x256xf32> -> vector<8x256xf32>
    %c17_i32_51 = arith.constant 17 : i32
    %76 = tpu.dynamic_rotate %72 by %c17_i32_51 dim 1 : vector<8x256xf32>, i32 -> vector<8x256xf32>
    %c0_52 = arith.constant 0 : index
    %c0_53 = arith.constant 0 : index
    %77 = vector.load %arg1[%c0_52, %c0_53] : memref<9x256xf32, #tpu.memory_space<vmem>>, vector<1x256xf32>
    %78 = vector.broadcast %77 : vector<1x256xf32> to vector<8x256xf32>
    %79 = arith.mulf %76, %78 : vector<8x256xf32>
    %c0_54 = arith.constant 0 : index
    %c0_55 = arith.constant 0 : index
    %c0_56 = arith.constant 0 : index
    %80 = vector.load %arg5[%c0_54, %c0_55, %c0_56] : memref<9x8x8xf32, #tpu.memory_space<vmem>>, vector<1x8x8xf32>
    %81 = vector.shape_cast %80 : vector<1x8x8xf32> to vector<8x8xf32>
    %cst_57 = arith.constant dense<0.000000e+00> : vector<8x256xf32>
    %82 = tpu.matmul %81, %79, %cst_57 {dimension_numbers = #tpu.dot_dimension_numbers<[1], [0], [0], [1], [0, 0, 1, 1], [], []>} : vector<8x8xf32>, vector<8x256xf32>, vector<8x256xf32> -> vector<8x256xf32>
    %83 = arith.addf %75, %82 : vector<8x256xf32>
    %c16_i32_58 = arith.constant 16 : i32
    %84 = tpu.dynamic_rotate %72 by %c16_i32_58 dim 1 : vector<8x256xf32>, i32 -> vector<8x256xf32>
    %c1_59 = arith.constant 1 : index
    %c0_60 = arith.constant 0 : index
    %85 = vector.load %arg1[%c1_59, %c0_60] : memref<9x256xf32, #tpu.memory_space<vmem>>, vector<1x256xf32>
    %86 = vector.broadcast %85 : vector<1x256xf32> to vector<8x256xf32>
    %87 = arith.mulf %84, %86 : vector<8x256xf32>
    %c1_61 = arith.constant 1 : index
    %c0_62 = arith.constant 0 : index
    %c0_63 = arith.constant 0 : index
    %88 = vector.load %arg5[%c1_61, %c0_62, %c0_63] : memref<9x8x8xf32, #tpu.memory_space<vmem>>, vector<1x8x8xf32>
    %89 = vector.shape_cast %88 : vector<1x8x8xf32> to vector<8x8xf32>
    %cst_64 = arith.constant dense<0.000000e+00> : vector<8x256xf32>
    %90 = tpu.matmul %89, %87, %cst_64 {dimension_numbers = #tpu.dot_dimension_numbers<[1], [0], [0], [1], [0, 0, 1, 1], [], []>} : vector<8x8xf32>, vector<8x256xf32>, vector<8x256xf32> -> vector<8x256xf32>
    %91 = arith.addf %83, %90 : vector<8x256xf32>
    %c15_i32_65 = arith.constant 15 : i32
    %92 = tpu.dynamic_rotate %72 by %c15_i32_65 dim 1 : vector<8x256xf32>, i32 -> vector<8x256xf32>
    %c2_66 = arith.constant 2 : index
    %c0_67 = arith.constant 0 : index
    %93 = vector.load %arg1[%c2_66, %c0_67] : memref<9x256xf32, #tpu.memory_space<vmem>>, vector<1x256xf32>
    %94 = vector.broadcast %93 : vector<1x256xf32> to vector<8x256xf32>
    %95 = arith.mulf %92, %94 : vector<8x256xf32>
    %c2_68 = arith.constant 2 : index
    %c0_69 = arith.constant 0 : index
    %c0_70 = arith.constant 0 : index
    %96 = vector.load %arg5[%c2_68, %c0_69, %c0_70] : memref<9x8x8xf32, #tpu.memory_space<vmem>>, vector<1x8x8xf32>
    %97 = vector.shape_cast %96 : vector<1x8x8xf32> to vector<8x8xf32>
    %cst_71 = arith.constant dense<0.000000e+00> : vector<8x256xf32>
    %98 = tpu.matmul %97, %95, %cst_71 {dimension_numbers = #tpu.dot_dimension_numbers<[1], [0], [0], [1], [0, 0, 1, 1], [], []>} : vector<8x8xf32>, vector<8x256xf32>, vector<8x256xf32> -> vector<8x256xf32>
    %99 = arith.addf %91, %98 : vector<8x256xf32>
    %c1_i32_72 = arith.constant 1 : i32
    %100 = tpu.dynamic_rotate %72 by %c1_i32_72 dim 1 : vector<8x256xf32>, i32 -> vector<8x256xf32>
    %c3_73 = arith.constant 3 : index
    %c0_74 = arith.constant 0 : index
    %101 = vector.load %arg1[%c3_73, %c0_74] : memref<9x256xf32, #tpu.memory_space<vmem>>, vector<1x256xf32>
    %102 = vector.broadcast %101 : vector<1x256xf32> to vector<8x256xf32>
    %103 = arith.mulf %100, %102 : vector<8x256xf32>
    %c3_75 = arith.constant 3 : index
    %c0_76 = arith.constant 0 : index
    %c0_77 = arith.constant 0 : index
    %104 = vector.load %arg5[%c3_75, %c0_76, %c0_77] : memref<9x8x8xf32, #tpu.memory_space<vmem>>, vector<1x8x8xf32>
    %105 = vector.shape_cast %104 : vector<1x8x8xf32> to vector<8x8xf32>
    %cst_78 = arith.constant dense<0.000000e+00> : vector<8x256xf32>
    %106 = tpu.matmul %105, %103, %cst_78 {dimension_numbers = #tpu.dot_dimension_numbers<[1], [0], [0], [1], [0, 0, 1, 1], [], []>} : vector<8x8xf32>, vector<8x256xf32>, vector<8x256xf32> -> vector<8x256xf32>
    %107 = arith.addf %99, %106 : vector<8x256xf32>
    %c255_i32_79 = arith.constant 255 : i32
    %108 = tpu.dynamic_rotate %72 by %c255_i32_79 dim 1 : vector<8x256xf32>, i32 -> vector<8x256xf32>
    %c5_80 = arith.constant 5 : index
    %c0_81 = arith.constant 0 : index
    %109 = vector.load %arg1[%c5_80, %c0_81] : memref<9x256xf32, #tpu.memory_space<vmem>>, vector<1x256xf32>
    %110 = vector.broadcast %109 : vector<1x256xf32> to vector<8x256xf32>
    %111 = arith.mulf %108, %110 : vector<8x256xf32>
    %c5_82 = arith.constant 5 : index
    %c0_83 = arith.constant 0 : index
    %c0_84 = arith.constant 0 : index
    %112 = vector.load %arg5[%c5_82, %c0_83, %c0_84] : memref<9x8x8xf32, #tpu.memory_space<vmem>>, vector<1x8x8xf32>
    %113 = vector.shape_cast %112 : vector<1x8x8xf32> to vector<8x8xf32>
    %cst_85 = arith.constant dense<0.000000e+00> : vector<8x256xf32>
    %114 = tpu.matmul %113, %111, %cst_85 {dimension_numbers = #tpu.dot_dimension_numbers<[1], [0], [0], [1], [0, 0, 1, 1], [], []>} : vector<8x8xf32>, vector<8x256xf32>, vector<8x256xf32> -> vector<8x256xf32>
    %115 = arith.addf %107, %114 : vector<8x256xf32>
    %c241_i32_86 = arith.constant 241 : i32
    %116 = tpu.dynamic_rotate %72 by %c241_i32_86 dim 1 : vector<8x256xf32>, i32 -> vector<8x256xf32>
    %c6_87 = arith.constant 6 : index
    %c0_88 = arith.constant 0 : index
    %117 = vector.load %arg1[%c6_87, %c0_88] : memref<9x256xf32, #tpu.memory_space<vmem>>, vector<1x256xf32>
    %118 = vector.broadcast %117 : vector<1x256xf32> to vector<8x256xf32>
    %119 = arith.mulf %116, %118 : vector<8x256xf32>
    %c6_89 = arith.constant 6 : index
    %c0_90 = arith.constant 0 : index
    %c0_91 = arith.constant 0 : index
    %120 = vector.load %arg5[%c6_89, %c0_90, %c0_91] : memref<9x8x8xf32, #tpu.memory_space<vmem>>, vector<1x8x8xf32>
    %121 = vector.shape_cast %120 : vector<1x8x8xf32> to vector<8x8xf32>
    %cst_92 = arith.constant dense<0.000000e+00> : vector<8x256xf32>
    %122 = tpu.matmul %121, %119, %cst_92 {dimension_numbers = #tpu.dot_dimension_numbers<[1], [0], [0], [1], [0, 0, 1, 1], [], []>} : vector<8x8xf32>, vector<8x256xf32>, vector<8x256xf32> -> vector<8x256xf32>
    %123 = arith.addf %115, %122 : vector<8x256xf32>
    %c240_i32_93 = arith.constant 240 : i32
    %124 = tpu.dynamic_rotate %72 by %c240_i32_93 dim 1 : vector<8x256xf32>, i32 -> vector<8x256xf32>
    %c7_94 = arith.constant 7 : index
    %c0_95 = arith.constant 0 : index
    %125 = vector.load %arg1[%c7_94, %c0_95] : memref<9x256xf32, #tpu.memory_space<vmem>>, vector<1x256xf32>
    %126 = vector.broadcast %125 : vector<1x256xf32> to vector<8x256xf32>
    %127 = arith.mulf %124, %126 : vector<8x256xf32>
    %c7_96 = arith.constant 7 : index
    %c0_97 = arith.constant 0 : index
    %c0_98 = arith.constant 0 : index
    %128 = vector.load %arg5[%c7_96, %c0_97, %c0_98] : memref<9x8x8xf32, #tpu.memory_space<vmem>>, vector<1x8x8xf32>
    %129 = vector.shape_cast %128 : vector<1x8x8xf32> to vector<8x8xf32>
    %cst_99 = arith.constant dense<0.000000e+00> : vector<8x256xf32>
    %130 = tpu.matmul %129, %127, %cst_99 {dimension_numbers = #tpu.dot_dimension_numbers<[1], [0], [0], [1], [0, 0, 1, 1], [], []>} : vector<8x8xf32>, vector<8x256xf32>, vector<8x256xf32> -> vector<8x256xf32>
    %131 = arith.addf %123, %130 : vector<8x256xf32>
    %c239_i32_100 = arith.constant 239 : i32
    %132 = tpu.dynamic_rotate %72 by %c239_i32_100 dim 1 : vector<8x256xf32>, i32 -> vector<8x256xf32>
    %c8_101 = arith.constant 8 : index
    %c0_102 = arith.constant 0 : index
    %133 = vector.load %arg1[%c8_101, %c0_102] : memref<9x256xf32, #tpu.memory_space<vmem>>, vector<1x256xf32>
    %134 = vector.broadcast %133 : vector<1x256xf32> to vector<8x256xf32>
    %135 = arith.mulf %132, %134 : vector<8x256xf32>
    %c8_103 = arith.constant 8 : index
    %c0_104 = arith.constant 0 : index
    %c0_105 = arith.constant 0 : index
    %136 = vector.load %arg5[%c8_103, %c0_104, %c0_105] : memref<9x8x8xf32, #tpu.memory_space<vmem>>, vector<1x8x8xf32>
    %137 = vector.shape_cast %136 : vector<1x8x8xf32> to vector<8x8xf32>
    %cst_106 = arith.constant dense<0.000000e+00> : vector<8x256xf32>
    %138 = tpu.matmul %137, %135, %cst_106 {dimension_numbers = #tpu.dot_dimension_numbers<[1], [0], [0], [1], [0, 0, 1, 1], [], []>} : vector<8x8xf32>, vector<8x256xf32>, vector<8x256xf32> -> vector<8x256xf32>
    %139 = arith.addf %131, %138 : vector<8x256xf32>
    %c0_107 = arith.constant 0 : index
    %c0_108 = arith.constant 0 : index
    %140 = vector.load %arg6[%c0_107, %c0_108] : memref<8x1xf32, #tpu.memory_space<vmem>>, vector<8x1xf32>
    %141 = vector.broadcast %140 : vector<8x1xf32> to vector<8x256xf32>
    %142 = arith.addf %139, %141 : vector<8x256xf32>
    %cst_109 = arith.constant 0.000000e+00 : f32
    %143 = vector.broadcast %cst_109 : f32 to vector<8x256xf32>
    %144 = arith.maximumf %142, %143 : vector<8x256xf32>
    %c4_110 = arith.constant 4 : index
    %c0_111 = arith.constant 0 : index
    %c0_112 = arith.constant 0 : index
    %145 = vector.load %arg7[%c4_110, %c0_111, %c0_112] : memref<9x16x8xf32, #tpu.memory_space<vmem>>, vector<1x16x8xf32>
    %146 = vector.shape_cast %145 : vector<1x16x8xf32> to vector<16x8xf32>
    %cst_113 = arith.constant dense<0.000000e+00> : vector<16x256xf32>
    %147 = tpu.matmul %146, %144, %cst_113 {dimension_numbers = #tpu.dot_dimension_numbers<[1], [0], [0], [1], [0, 0, 1, 1], [], []>} : vector<16x8xf32>, vector<8x256xf32>, vector<16x256xf32> -> vector<16x256xf32>
    %c17_i32_114 = arith.constant 17 : i32
    %148 = tpu.dynamic_rotate %144 by %c17_i32_114 dim 1 : vector<8x256xf32>, i32 -> vector<8x256xf32>
    %c0_115 = arith.constant 0 : index
    %c0_116 = arith.constant 0 : index
    %149 = vector.load %arg1[%c0_115, %c0_116] : memref<9x256xf32, #tpu.memory_space<vmem>>, vector<1x256xf32>
    %150 = vector.broadcast %149 : vector<1x256xf32> to vector<8x256xf32>
    %151 = arith.mulf %148, %150 : vector<8x256xf32>
    %c0_117 = arith.constant 0 : index
    %c0_118 = arith.constant 0 : index
    %c0_119 = arith.constant 0 : index
    %152 = vector.load %arg7[%c0_117, %c0_118, %c0_119] : memref<9x16x8xf32, #tpu.memory_space<vmem>>, vector<1x16x8xf32>
    %153 = vector.shape_cast %152 : vector<1x16x8xf32> to vector<16x8xf32>
    %cst_120 = arith.constant dense<0.000000e+00> : vector<16x256xf32>
    %154 = tpu.matmul %153, %151, %cst_120 {dimension_numbers = #tpu.dot_dimension_numbers<[1], [0], [0], [1], [0, 0, 1, 1], [], []>} : vector<16x8xf32>, vector<8x256xf32>, vector<16x256xf32> -> vector<16x256xf32>
    %155 = arith.addf %147, %154 : vector<16x256xf32>
    %c16_i32_121 = arith.constant 16 : i32
    %156 = tpu.dynamic_rotate %144 by %c16_i32_121 dim 1 : vector<8x256xf32>, i32 -> vector<8x256xf32>
    %c1_122 = arith.constant 1 : index
    %c0_123 = arith.constant 0 : index
    %157 = vector.load %arg1[%c1_122, %c0_123] : memref<9x256xf32, #tpu.memory_space<vmem>>, vector<1x256xf32>
    %158 = vector.broadcast %157 : vector<1x256xf32> to vector<8x256xf32>
    %159 = arith.mulf %156, %158 : vector<8x256xf32>
    %c1_124 = arith.constant 1 : index
    %c0_125 = arith.constant 0 : index
    %c0_126 = arith.constant 0 : index
    %160 = vector.load %arg7[%c1_124, %c0_125, %c0_126] : memref<9x16x8xf32, #tpu.memory_space<vmem>>, vector<1x16x8xf32>
    %161 = vector.shape_cast %160 : vector<1x16x8xf32> to vector<16x8xf32>
    %cst_127 = arith.constant dense<0.000000e+00> : vector<16x256xf32>
    %162 = tpu.matmul %161, %159, %cst_127 {dimension_numbers = #tpu.dot_dimension_numbers<[1], [0], [0], [1], [0, 0, 1, 1], [], []>} : vector<16x8xf32>, vector<8x256xf32>, vector<16x256xf32> -> vector<16x256xf32>
    %163 = arith.addf %155, %162 : vector<16x256xf32>
    %c15_i32_128 = arith.constant 15 : i32
    %164 = tpu.dynamic_rotate %144 by %c15_i32_128 dim 1 : vector<8x256xf32>, i32 -> vector<8x256xf32>
    %c2_129 = arith.constant 2 : index
    %c0_130 = arith.constant 0 : index
    %165 = vector.load %arg1[%c2_129, %c0_130] : memref<9x256xf32, #tpu.memory_space<vmem>>, vector<1x256xf32>
    %166 = vector.broadcast %165 : vector<1x256xf32> to vector<8x256xf32>
    %167 = arith.mulf %164, %166 : vector<8x256xf32>
    %c2_131 = arith.constant 2 : index
    %c0_132 = arith.constant 0 : index
    %c0_133 = arith.constant 0 : index
    %168 = vector.load %arg7[%c2_131, %c0_132, %c0_133] : memref<9x16x8xf32, #tpu.memory_space<vmem>>, vector<1x16x8xf32>
    %169 = vector.shape_cast %168 : vector<1x16x8xf32> to vector<16x8xf32>
    %cst_134 = arith.constant dense<0.000000e+00> : vector<16x256xf32>
    %170 = tpu.matmul %169, %167, %cst_134 {dimension_numbers = #tpu.dot_dimension_numbers<[1], [0], [0], [1], [0, 0, 1, 1], [], []>} : vector<16x8xf32>, vector<8x256xf32>, vector<16x256xf32> -> vector<16x256xf32>
    %171 = arith.addf %163, %170 : vector<16x256xf32>
    %c1_i32_135 = arith.constant 1 : i32
    %172 = tpu.dynamic_rotate %144 by %c1_i32_135 dim 1 : vector<8x256xf32>, i32 -> vector<8x256xf32>
    %c3_136 = arith.constant 3 : index
    %c0_137 = arith.constant 0 : index
    %173 = vector.load %arg1[%c3_136, %c0_137] : memref<9x256xf32, #tpu.memory_space<vmem>>, vector<1x256xf32>
    %174 = vector.broadcast %173 : vector<1x256xf32> to vector<8x256xf32>
    %175 = arith.mulf %172, %174 : vector<8x256xf32>
    %c3_138 = arith.constant 3 : index
    %c0_139 = arith.constant 0 : index
    %c0_140 = arith.constant 0 : index
    %176 = vector.load %arg7[%c3_138, %c0_139, %c0_140] : memref<9x16x8xf32, #tpu.memory_space<vmem>>, vector<1x16x8xf32>
    %177 = vector.shape_cast %176 : vector<1x16x8xf32> to vector<16x8xf32>
    %cst_141 = arith.constant dense<0.000000e+00> : vector<16x256xf32>
    %178 = tpu.matmul %177, %175, %cst_141 {dimension_numbers = #tpu.dot_dimension_numbers<[1], [0], [0], [1], [0, 0, 1, 1], [], []>} : vector<16x8xf32>, vector<8x256xf32>, vector<16x256xf32> -> vector<16x256xf32>
    %179 = arith.addf %171, %178 : vector<16x256xf32>
    %c255_i32_142 = arith.constant 255 : i32
    %180 = tpu.dynamic_rotate %144 by %c255_i32_142 dim 1 : vector<8x256xf32>, i32 -> vector<8x256xf32>
    %c5_143 = arith.constant 5 : index
    %c0_144 = arith.constant 0 : index
    %181 = vector.load %arg1[%c5_143, %c0_144] : memref<9x256xf32, #tpu.memory_space<vmem>>, vector<1x256xf32>
    %182 = vector.broadcast %181 : vector<1x256xf32> to vector<8x256xf32>
    %183 = arith.mulf %180, %182 : vector<8x256xf32>
    %c5_145 = arith.constant 5 : index
    %c0_146 = arith.constant 0 : index
    %c0_147 = arith.constant 0 : index
    %184 = vector.load %arg7[%c5_145, %c0_146, %c0_147] : memref<9x16x8xf32, #tpu.memory_space<vmem>>, vector<1x16x8xf32>
    %185 = vector.shape_cast %184 : vector<1x16x8xf32> to vector<16x8xf32>
    %cst_148 = arith.constant dense<0.000000e+00> : vector<16x256xf32>
    %186 = tpu.matmul %185, %183, %cst_148 {dimension_numbers = #tpu.dot_dimension_numbers<[1], [0], [0], [1], [0, 0, 1, 1], [], []>} : vector<16x8xf32>, vector<8x256xf32>, vector<16x256xf32> -> vector<16x256xf32>
    %187 = arith.addf %179, %186 : vector<16x256xf32>
    %c241_i32_149 = arith.constant 241 : i32
    %188 = tpu.dynamic_rotate %144 by %c241_i32_149 dim 1 : vector<8x256xf32>, i32 -> vector<8x256xf32>
    %c6_150 = arith.constant 6 : index
    %c0_151 = arith.constant 0 : index
    %189 = vector.load %arg1[%c6_150, %c0_151] : memref<9x256xf32, #tpu.memory_space<vmem>>, vector<1x256xf32>
    %190 = vector.broadcast %189 : vector<1x256xf32> to vector<8x256xf32>
    %191 = arith.mulf %188, %190 : vector<8x256xf32>
    %c6_152 = arith.constant 6 : index
    %c0_153 = arith.constant 0 : index
    %c0_154 = arith.constant 0 : index
    %192 = vector.load %arg7[%c6_152, %c0_153, %c0_154] : memref<9x16x8xf32, #tpu.memory_space<vmem>>, vector<1x16x8xf32>
    %193 = vector.shape_cast %192 : vector<1x16x8xf32> to vector<16x8xf32>
    %cst_155 = arith.constant dense<0.000000e+00> : vector<16x256xf32>
    %194 = tpu.matmul %193, %191, %cst_155 {dimension_numbers = #tpu.dot_dimension_numbers<[1], [0], [0], [1], [0, 0, 1, 1], [], []>} : vector<16x8xf32>, vector<8x256xf32>, vector<16x256xf32> -> vector<16x256xf32>
    %195 = arith.addf %187, %194 : vector<16x256xf32>
    %c240_i32_156 = arith.constant 240 : i32
    %196 = tpu.dynamic_rotate %144 by %c240_i32_156 dim 1 : vector<8x256xf32>, i32 -> vector<8x256xf32>
    %c7_157 = arith.constant 7 : index
    %c0_158 = arith.constant 0 : index
    %197 = vector.load %arg1[%c7_157, %c0_158] : memref<9x256xf32, #tpu.memory_space<vmem>>, vector<1x256xf32>
    %198 = vector.broadcast %197 : vector<1x256xf32> to vector<8x256xf32>
    %199 = arith.mulf %196, %198 : vector<8x256xf32>
    %c7_159 = arith.constant 7 : index
    %c0_160 = arith.constant 0 : index
    %c0_161 = arith.constant 0 : index
    %200 = vector.load %arg7[%c7_159, %c0_160, %c0_161] : memref<9x16x8xf32, #tpu.memory_space<vmem>>, vector<1x16x8xf32>
    %201 = vector.shape_cast %200 : vector<1x16x8xf32> to vector<16x8xf32>
    %cst_162 = arith.constant dense<0.000000e+00> : vector<16x256xf32>
    %202 = tpu.matmul %201, %199, %cst_162 {dimension_numbers = #tpu.dot_dimension_numbers<[1], [0], [0], [1], [0, 0, 1, 1], [], []>} : vector<16x8xf32>, vector<8x256xf32>, vector<16x256xf32> -> vector<16x256xf32>
    %203 = arith.addf %195, %202 : vector<16x256xf32>
    %c239_i32_163 = arith.constant 239 : i32
    %204 = tpu.dynamic_rotate %144 by %c239_i32_163 dim 1 : vector<8x256xf32>, i32 -> vector<8x256xf32>
    %c8_164 = arith.constant 8 : index
    %c0_165 = arith.constant 0 : index
    %205 = vector.load %arg1[%c8_164, %c0_165] : memref<9x256xf32, #tpu.memory_space<vmem>>, vector<1x256xf32>
    %206 = vector.broadcast %205 : vector<1x256xf32> to vector<8x256xf32>
    %207 = arith.mulf %204, %206 : vector<8x256xf32>
    %c8_166 = arith.constant 8 : index
    %c0_167 = arith.constant 0 : index
    %c0_168 = arith.constant 0 : index
    %208 = vector.load %arg7[%c8_166, %c0_167, %c0_168] : memref<9x16x8xf32, #tpu.memory_space<vmem>>, vector<1x16x8xf32>
    %209 = vector.shape_cast %208 : vector<1x16x8xf32> to vector<16x8xf32>
    %cst_169 = arith.constant dense<0.000000e+00> : vector<16x256xf32>
    %210 = tpu.matmul %209, %207, %cst_169 {dimension_numbers = #tpu.dot_dimension_numbers<[1], [0], [0], [1], [0, 0, 1, 1], [], []>} : vector<16x8xf32>, vector<8x256xf32>, vector<16x256xf32> -> vector<16x256xf32>
    %211 = arith.addf %203, %210 : vector<16x256xf32>
    %c0_170 = arith.constant 0 : index
    %c0_171 = arith.constant 0 : index
    %212 = vector.load %arg8[%c0_170, %c0_171] : memref<16x1xf32, #tpu.memory_space<vmem>>, vector<16x1xf32>
    %213 = vector.broadcast %212 : vector<16x1xf32> to vector<16x256xf32>
    %214 = arith.addf %211, %213 : vector<16x256xf32>
    %cst_172 = arith.constant 0.000000e+00 : f32
    %215 = vector.broadcast %cst_172 : f32 to vector<16x256xf32>
    %216 = arith.maximumf %214, %215 : vector<16x256xf32>
    %c4_173 = arith.constant 4 : index
    %c0_174 = arith.constant 0 : index
    %c0_175 = arith.constant 0 : index
    %217 = vector.load %arg9[%c4_173, %c0_174, %c0_175] : memref<9x16x16xf32, #tpu.memory_space<vmem>>, vector<1x16x16xf32>
    %218 = vector.shape_cast %217 : vector<1x16x16xf32> to vector<16x16xf32>
    %cst_176 = arith.constant dense<0.000000e+00> : vector<16x256xf32>
    %219 = tpu.matmul %218, %216, %cst_176 {dimension_numbers = #tpu.dot_dimension_numbers<[1], [0], [0], [1], [0, 0, 1, 1], [], []>} : vector<16x16xf32>, vector<16x256xf32>, vector<16x256xf32> -> vector<16x256xf32>
    %c17_i32_177 = arith.constant 17 : i32
    %220 = tpu.dynamic_rotate %216 by %c17_i32_177 dim 1 : vector<16x256xf32>, i32 -> vector<16x256xf32>
    %c0_178 = arith.constant 0 : index
    %c0_179 = arith.constant 0 : index
    %221 = vector.load %arg1[%c0_178, %c0_179] : memref<9x256xf32, #tpu.memory_space<vmem>>, vector<1x256xf32>
    %222 = vector.broadcast %221 : vector<1x256xf32> to vector<16x256xf32>
    %223 = arith.mulf %220, %222 : vector<16x256xf32>
    %c0_180 = arith.constant 0 : index
    %c0_181 = arith.constant 0 : index
    %c0_182 = arith.constant 0 : index
    %224 = vector.load %arg9[%c0_180, %c0_181, %c0_182] : memref<9x16x16xf32, #tpu.memory_space<vmem>>, vector<1x16x16xf32>
    %225 = vector.shape_cast %224 : vector<1x16x16xf32> to vector<16x16xf32>
    %cst_183 = arith.constant dense<0.000000e+00> : vector<16x256xf32>
    %226 = tpu.matmul %225, %223, %cst_183 {dimension_numbers = #tpu.dot_dimension_numbers<[1], [0], [0], [1], [0, 0, 1, 1], [], []>} : vector<16x16xf32>, vector<16x256xf32>, vector<16x256xf32> -> vector<16x256xf32>
    %227 = arith.addf %219, %226 : vector<16x256xf32>
    %c16_i32_184 = arith.constant 16 : i32
    %228 = tpu.dynamic_rotate %216 by %c16_i32_184 dim 1 : vector<16x256xf32>, i32 -> vector<16x256xf32>
    %c1_185 = arith.constant 1 : index
    %c0_186 = arith.constant 0 : index
    %229 = vector.load %arg1[%c1_185, %c0_186] : memref<9x256xf32, #tpu.memory_space<vmem>>, vector<1x256xf32>
    %230 = vector.broadcast %229 : vector<1x256xf32> to vector<16x256xf32>
    %231 = arith.mulf %228, %230 : vector<16x256xf32>
    %c1_187 = arith.constant 1 : index
    %c0_188 = arith.constant 0 : index
    %c0_189 = arith.constant 0 : index
    %232 = vector.load %arg9[%c1_187, %c0_188, %c0_189] : memref<9x16x16xf32, #tpu.memory_space<vmem>>, vector<1x16x16xf32>
    %233 = vector.shape_cast %232 : vector<1x16x16xf32> to vector<16x16xf32>
    %cst_190 = arith.constant dense<0.000000e+00> : vector<16x256xf32>
    %234 = tpu.matmul %233, %231, %cst_190 {dimension_numbers = #tpu.dot_dimension_numbers<[1], [0], [0], [1], [0, 0, 1, 1], [], []>} : vector<16x16xf32>, vector<16x256xf32>, vector<16x256xf32> -> vector<16x256xf32>
    %235 = arith.addf %227, %234 : vector<16x256xf32>
    %c15_i32_191 = arith.constant 15 : i32
    %236 = tpu.dynamic_rotate %216 by %c15_i32_191 dim 1 : vector<16x256xf32>, i32 -> vector<16x256xf32>
    %c2_192 = arith.constant 2 : index
    %c0_193 = arith.constant 0 : index
    %237 = vector.load %arg1[%c2_192, %c0_193] : memref<9x256xf32, #tpu.memory_space<vmem>>, vector<1x256xf32>
    %238 = vector.broadcast %237 : vector<1x256xf32> to vector<16x256xf32>
    %239 = arith.mulf %236, %238 : vector<16x256xf32>
    %c2_194 = arith.constant 2 : index
    %c0_195 = arith.constant 0 : index
    %c0_196 = arith.constant 0 : index
    %240 = vector.load %arg9[%c2_194, %c0_195, %c0_196] : memref<9x16x16xf32, #tpu.memory_space<vmem>>, vector<1x16x16xf32>
    %241 = vector.shape_cast %240 : vector<1x16x16xf32> to vector<16x16xf32>
    %cst_197 = arith.constant dense<0.000000e+00> : vector<16x256xf32>
    %242 = tpu.matmul %241, %239, %cst_197 {dimension_numbers = #tpu.dot_dimension_numbers<[1], [0], [0], [1], [0, 0, 1, 1], [], []>} : vector<16x16xf32>, vector<16x256xf32>, vector<16x256xf32> -> vector<16x256xf32>
    %243 = arith.addf %235, %242 : vector<16x256xf32>
    %c1_i32_198 = arith.constant 1 : i32
    %244 = tpu.dynamic_rotate %216 by %c1_i32_198 dim 1 : vector<16x256xf32>, i32 -> vector<16x256xf32>
    %c3_199 = arith.constant 3 : index
    %c0_200 = arith.constant 0 : index
    %245 = vector.load %arg1[%c3_199, %c0_200] : memref<9x256xf32, #tpu.memory_space<vmem>>, vector<1x256xf32>
    %246 = vector.broadcast %245 : vector<1x256xf32> to vector<16x256xf32>
    %247 = arith.mulf %244, %246 : vector<16x256xf32>
    %c3_201 = arith.constant 3 : index
    %c0_202 = arith.constant 0 : index
    %c0_203 = arith.constant 0 : index
    %248 = vector.load %arg9[%c3_201, %c0_202, %c0_203] : memref<9x16x16xf32, #tpu.memory_space<vmem>>, vector<1x16x16xf32>
    %249 = vector.shape_cast %248 : vector<1x16x16xf32> to vector<16x16xf32>
    %cst_204 = arith.constant dense<0.000000e+00> : vector<16x256xf32>
    %250 = tpu.matmul %249, %247, %cst_204 {dimension_numbers = #tpu.dot_dimension_numbers<[1], [0], [0], [1], [0, 0, 1, 1], [], []>} : vector<16x16xf32>, vector<16x256xf32>, vector<16x256xf32> -> vector<16x256xf32>
    %251 = arith.addf %243, %250 : vector<16x256xf32>
    %c255_i32_205 = arith.constant 255 : i32
    %252 = tpu.dynamic_rotate %216 by %c255_i32_205 dim 1 : vector<16x256xf32>, i32 -> vector<16x256xf32>
    %c5_206 = arith.constant 5 : index
    %c0_207 = arith.constant 0 : index
    %253 = vector.load %arg1[%c5_206, %c0_207] : memref<9x256xf32, #tpu.memory_space<vmem>>, vector<1x256xf32>
    %254 = vector.broadcast %253 : vector<1x256xf32> to vector<16x256xf32>
    %255 = arith.mulf %252, %254 : vector<16x256xf32>
    %c5_208 = arith.constant 5 : index
    %c0_209 = arith.constant 0 : index
    %c0_210 = arith.constant 0 : index
    %256 = vector.load %arg9[%c5_208, %c0_209, %c0_210] : memref<9x16x16xf32, #tpu.memory_space<vmem>>, vector<1x16x16xf32>
    %257 = vector.shape_cast %256 : vector<1x16x16xf32> to vector<16x16xf32>
    %cst_211 = arith.constant dense<0.000000e+00> : vector<16x256xf32>
    %258 = tpu.matmul %257, %255, %cst_211 {dimension_numbers = #tpu.dot_dimension_numbers<[1], [0], [0], [1], [0, 0, 1, 1], [], []>} : vector<16x16xf32>, vector<16x256xf32>, vector<16x256xf32> -> vector<16x256xf32>
    %259 = arith.addf %251, %258 : vector<16x256xf32>
    %c241_i32_212 = arith.constant 241 : i32
    %260 = tpu.dynamic_rotate %216 by %c241_i32_212 dim 1 : vector<16x256xf32>, i32 -> vector<16x256xf32>
    %c6_213 = arith.constant 6 : index
    %c0_214 = arith.constant 0 : index
    %261 = vector.load %arg1[%c6_213, %c0_214] : memref<9x256xf32, #tpu.memory_space<vmem>>, vector<1x256xf32>
    %262 = vector.broadcast %261 : vector<1x256xf32> to vector<16x256xf32>
    %263 = arith.mulf %260, %262 : vector<16x256xf32>
    %c6_215 = arith.constant 6 : index
    %c0_216 = arith.constant 0 : index
    %c0_217 = arith.constant 0 : index
    %264 = vector.load %arg9[%c6_215, %c0_216, %c0_217] : memref<9x16x16xf32, #tpu.memory_space<vmem>>, vector<1x16x16xf32>
    %265 = vector.shape_cast %264 : vector<1x16x16xf32> to vector<16x16xf32>
    %cst_218 = arith.constant dense<0.000000e+00> : vector<16x256xf32>
    %266 = tpu.matmul %265, %263, %cst_218 {dimension_numbers = #tpu.dot_dimension_numbers<[1], [0], [0], [1], [0, 0, 1, 1], [], []>} : vector<16x16xf32>, vector<16x256xf32>, vector<16x256xf32> -> vector<16x256xf32>
    %267 = arith.addf %259, %266 : vector<16x256xf32>
    %c240_i32_219 = arith.constant 240 : i32
    %268 = tpu.dynamic_rotate %216 by %c240_i32_219 dim 1 : vector<16x256xf32>, i32 -> vector<16x256xf32>
    %c7_220 = arith.constant 7 : index
    %c0_221 = arith.constant 0 : index
    %269 = vector.load %arg1[%c7_220, %c0_221] : memref<9x256xf32, #tpu.memory_space<vmem>>, vector<1x256xf32>
    %270 = vector.broadcast %269 : vector<1x256xf32> to vector<16x256xf32>
    %271 = arith.mulf %268, %270 : vector<16x256xf32>
    %c7_222 = arith.constant 7 : index
    %c0_223 = arith.constant 0 : index
    %c0_224 = arith.constant 0 : index
    %272 = vector.load %arg9[%c7_222, %c0_223, %c0_224] : memref<9x16x16xf32, #tpu.memory_space<vmem>>, vector<1x16x16xf32>
    %273 = vector.shape_cast %272 : vector<1x16x16xf32> to vector<16x16xf32>
    %cst_225 = arith.constant dense<0.000000e+00> : vector<16x256xf32>
    %274 = tpu.matmul %273, %271, %cst_225 {dimension_numbers = #tpu.dot_dimension_numbers<[1], [0], [0], [1], [0, 0, 1, 1], [], []>} : vector<16x16xf32>, vector<16x256xf32>, vector<16x256xf32> -> vector<16x256xf32>
    %275 = arith.addf %267, %274 : vector<16x256xf32>
    %c239_i32_226 = arith.constant 239 : i32
    %276 = tpu.dynamic_rotate %216 by %c239_i32_226 dim 1 : vector<16x256xf32>, i32 -> vector<16x256xf32>
    %c8_227 = arith.constant 8 : index
    %c0_228 = arith.constant 0 : index
    %277 = vector.load %arg1[%c8_227, %c0_228] : memref<9x256xf32, #tpu.memory_space<vmem>>, vector<1x256xf32>
    %278 = vector.broadcast %277 : vector<1x256xf32> to vector<16x256xf32>
    %279 = arith.mulf %276, %278 : vector<16x256xf32>
    %c8_229 = arith.constant 8 : index
    %c0_230 = arith.constant 0 : index
    %c0_231 = arith.constant 0 : index
    %280 = vector.load %arg9[%c8_229, %c0_230, %c0_231] : memref<9x16x16xf32, #tpu.memory_space<vmem>>, vector<1x16x16xf32>
    %281 = vector.shape_cast %280 : vector<1x16x16xf32> to vector<16x16xf32>
    %cst_232 = arith.constant dense<0.000000e+00> : vector<16x256xf32>
    %282 = tpu.matmul %281, %279, %cst_232 {dimension_numbers = #tpu.dot_dimension_numbers<[1], [0], [0], [1], [0, 0, 1, 1], [], []>} : vector<16x16xf32>, vector<16x256xf32>, vector<16x256xf32> -> vector<16x256xf32>
    %283 = arith.addf %275, %282 : vector<16x256xf32>
    %c0_233 = arith.constant 0 : index
    %c0_234 = arith.constant 0 : index
    %284 = vector.load %arg10[%c0_233, %c0_234] : memref<16x1xf32, #tpu.memory_space<vmem>>, vector<16x1xf32>
    %285 = vector.broadcast %284 : vector<16x1xf32> to vector<16x256xf32>
    %286 = arith.addf %283, %285 : vector<16x256xf32>
    %287 = arith.negf %142 : vector<8x256xf32>
    %288 = math.exp %287 : vector<8x256xf32>
    %cst_235 = arith.constant 1.000000e+00 : f32
    %289 = vector.broadcast %cst_235 : f32 to vector<8x256xf32>
    %290 = arith.addf %289, %288 : vector<8x256xf32>
    %291 = arith.divf %289, %290 : vector<8x256xf32>
    %292 = arith.negf %286 : vector<16x256xf32>
    %293 = math.exp %292 : vector<16x256xf32>
    %cst_236 = arith.constant 1.000000e+00 : f32
    %294 = vector.broadcast %cst_236 : f32 to vector<16x256xf32>
    %295 = arith.addf %294, %293 : vector<16x256xf32>
    %296 = arith.divf %294, %295 : vector<16x256xf32>
    %c0_237 = arith.constant 0 : index
    %c0_238 = arith.constant 0 : index
    %297 = vector.load %arg11[%c0_237, %c0_238] : memref<24x256xf32, #tpu.memory_space<vmem>>, vector<8x256xf32>
    tpu.vector_store %arg11[%c0_237, %c0_238], %291 {strides = array<i32>} : memref<24x256xf32, #tpu.memory_space<vmem>>, vector<8x256xf32>,
    %c8_239 = arith.constant 8 : index
    %c0_240 = arith.constant 0 : index
    %298 = vector.load %arg11[%c8_239, %c0_240] : memref<24x256xf32, #tpu.memory_space<vmem>>, vector<16x256xf32>
    tpu.vector_store %arg11[%c8_239, %c0_240], %296 {strides = array<i32>} : memref<24x256xf32, #tpu.memory_space<vmem>>, vector<16x256xf32>,
    return
  }
  func.func @transform_0(%arg0: i32) -> (i32, i32) {
    %c0_i32 = arith.constant 0 : i32
    %c0_i32_0 = arith.constant 0 : i32
    %c0_i32_1 = arith.constant 0 : i32
    return %c0_i32, %c0_i32_0 : i32, i32
  }
  func.func @transform_1(%arg0: i32) -> (i32, i32) {
    %c0_i32 = arith.constant 0 : i32
    %c0_i32_0 = arith.constant 0 : i32
    return %c0_i32, %arg0 : i32, i32
  }
  func.func @transform_2(%arg0: i32) -> (i32, i32, i32) {
    %c0_i32 = arith.constant 0 : i32
    %c0_i32_0 = arith.constant 0 : i32
    %c0_i32_1 = arith.constant 0 : i32
    %c0_i32_2 = arith.constant 0 : i32
    return %c0_i32, %c0_i32_0, %c0_i32_1 : i32, i32, i32
  }
  func.func @transform_3(%arg0: i32) -> (i32, i32) {
    %c0_i32 = arith.constant 0 : i32
    %c0_i32_0 = arith.constant 0 : i32
    %c0_i32_1 = arith.constant 0 : i32
    return %c0_i32, %c0_i32_0 : i32, i32
  }
  func.func @transform_4(%arg0: i32) -> (i32, i32, i32) {
    %c0_i32 = arith.constant 0 : i32
    %c0_i32_0 = arith.constant 0 : i32
    %c0_i32_1 = arith.constant 0 : i32
    %c0_i32_2 = arith.constant 0 : i32
    return %c0_i32, %c0_i32_0, %c0_i32_1 : i32, i32, i32
  }
  func.func @transform_5(%arg0: i32) -> (i32, i32) {
    %c0_i32 = arith.constant 0 : i32
    %c0_i32_0 = arith.constant 0 : i32
    %c0_i32_1 = arith.constant 0 : i32
    return %c0_i32, %c0_i32_0 : i32, i32
  }
  func.func @transform_6(%arg0: i32) -> (i32, i32, i32) {
    %c0_i32 = arith.constant 0 : i32
    %c0_i32_0 = arith.constant 0 : i32
    %c0_i32_1 = arith.constant 0 : i32
    %c0_i32_2 = arith.constant 0 : i32
    return %c0_i32, %c0_i32_0, %c0_i32_1 : i32, i32, i32
  }
  func.func @transform_7(%arg0: i32) -> (i32, i32) {
    %c0_i32 = arith.constant 0 : i32
    %c0_i32_0 = arith.constant 0 : i32
    %c0_i32_1 = arith.constant 0 : i32
    return %c0_i32, %c0_i32_0 : i32, i32
  }
  func.func @transform_8(%arg0: i32) -> (i32, i32, i32) {
    %c0_i32 = arith.constant 0 : i32
    %c0_i32_0 = arith.constant 0 : i32
    %c0_i32_1 = arith.constant 0 : i32
    %c0_i32_2 = arith.constant 0 : i32
    return %c0_i32, %c0_i32_0, %c0_i32_1 : i32, i32, i32
  }
  func.func @transform_9(%arg0: i32) -> (i32, i32) {
    %c0_i32 = arith.constant 0 : i32
    %c0_i32_0 = arith.constant 0 : i32
    %c0_i32_1 = arith.constant 0 : i32
    return %c0_i32, %c0_i32_0 : i32, i32
  }
  func.func @transform_10(%arg0: i32) -> (i32, i32) {
    %c0_i32 = arith.constant 0 : i32
    %c0_i32_0 = arith.constant 0 : i32
    return %c0_i32, %arg0 : i32, i32
  }
}

</mosaic_0001>

<bundles_post_ra>
// kernel: component_encoder_forward.1
= control target key start
LH: loop header
LB: loop body
LE: loop exit
PB: predicated region body
PF: predicated region fallthrough
CT: control target
= control target key end

     0   :  { %s4459_s13 = smov 0   ;;  %s4461_s14 = smov 0   ;;  %s5284_s0 = inlined_call_operand.vmem [shape: f32[9,256], index: 0, kind: input, shape index: {}]   ;;  %s5285_s1 = inlined_call_operand.vmem [shape: f32[4,512], index: 1, kind: input, shape index: {}]   ;;  %s5286_s2 = inlined_call_operand.vmem [shape: f32[9,8,4], index: 2, kind: input, shape index: {}]   ;;  %s5287_s3 = inlined_call_operand.vmem [shape: f32[8,1], index: 3, kind: input, shape index: {}]   ;;  %s5288_s4 = inlined_call_operand.vmem [shape: f32[9,8,8], index: 4, kind: input, shape index: {}]   ;;  %s5289_s5 = inlined_call_operand.vmem [shape: f32[8,1], index: 5, kind: input, shape index: {}]   ;;  %s5290_s6 = inlined_call_operand.vmem [shape: f32[9,16,8], index: 6, kind: input, shape index: {}]   ;;  %s5291_s7 = inlined_call_operand.vmem [shape: f32[16,1], index: 7, kind: input, shape index: {}]   ;;  %s5292_s8 = inlined_call_operand.vmem [shape: f32[9,16,16], index: 8, kind: input, shape index: {}]   ;;  %s5293_s9 = inlined_call_operand.vmem [shape: f32[16,1], index: 9, kind: input, shape index: {}]   ;;  %s5294_s10 = inlined_call_operand.vmem [shape: f32[24,512], index: 10, kind: output, shape index: {}]  }
   0x1   :  { %s4463_s15 = smov 0  }
   0x2 LB: > { %s4472_s16 = sadd.s32 4294967295, %s4392_s15   ;;  %s4474_s17 = sadd.s32 1, %s4392_s15   ;;  %s4392_s15 = sphi %s4463_s15, %s5298_s15   ;;  %s4388_s14 = sphi %s4461_s14, %s5297_s14   ;;  %s4384_s13 = sphi %s4459_s13, %s5296_s13  }
   0x3   : > { %s239_s18 = ssub.s32 %s4392_s15, %s4474_s17  ;;  %s242_s19 = sadd.s32 1, %s4388_s14 }
   0x4   : > { %p240_p0 = scmp.eq.s32.totalorder %s239_s18, 0  ;;  %p252_p1 = scmp.ne.s32.totalorder %s4388_s14, %s4384_s13 }
   0x5   : > { %p253_p2 = scmp.eq.s32.totalorder %s4472_s16, 1  ;;  %p4035_p3 = scmp.ge.s32.totalorder %s4392_s15, 1 }
   0x6   : > { %s4482_s20 = scalar_select %p240_p0, %s4388_s14, %s242_s19  }
   0x7   : > { %p4484_p4 = por %p253_p2, %p252_p1  ;;  %p313_p5 = scmp.lt.s32.totalorder %s4392_s15, 3 }
   0x9   : > { %p314_p6 = pnand %p4035_p3, %p313_p5 }
   0xa   : > { %s4036_s22 = sshll.u32 (!%p314_p6), %s4472_s16, 1  ;;  %v4394_v0 = vmov (!%p314_p6), 0.0   ;;  %s4395_s27 = smov (!%p314_p6), 17   ;;  %v1289_v3 = vld [vmem:[%s5287_s3] sm:$0xff] (!%p314_p6)  ;;  %v4403_v4 = vmov (!%p314_p6), 0   ;;  %v367_v5 = vlaneseq (!%p314_p6)  ;;  %vm391_vm2 = vcmask (!%p314_p6), 1043456  }
   0xb   : > { %317 = sbr.rel (%p314_p6) target bundleno = 1681 (0x691), region = 60  ;;  %p351_p7 = scmp.lt.s32.totalorder (!%p314_p6), %s4036_s22, 3  ;;  %462 = vmatprep.mubr.f32.mxu0 (!%p314_p6), %v4394_v0  ;;  %1378 = vmatprep.mubr.f32.mxu1 (!%p314_p6), %v4394_v0  ;;  %v372_v10 = vld [vmem:[%s5284_s0] ss:$8 sm:$0x3] (!%p314_p6)  ;;  %vm387_vm3 = vcmask (!%p314_p6), 31744  }
   0xc   : > { %s4396_s28 = smov (!%p314_p6), 16   ;;  %s4397_s29 = smov (!%p314_p6), 15   ;;  %4343 = vset.pattern.permute.xlu0 (!%p314_p6), %v4403_v4  ;;  %4344 = vset.pattern.permute.xlu1 (!%p314_p6), %v4403_v4  ;;  %v375_v6 = vshrl.u32 (!%p314_p6), %v367_v5, 7  ;;  %v4525_v7 = vand.u32 (!%p314_p6), 127, %v367_v5  ;;  %v386_v24 = vld [vmem:[%s5286_s2] sm:$0xff] (!%p314_p6)  ;;  %v4046_v44 = vld [vmem:[%s5286_s2 + $0x8] sm:$0xff] (!%p314_p6) }
   0xd   : > { %s4398_s30 = smov (!%p314_p6), 1   ;;  %s4399_s11 = smov (!%p314_p6), 127   ;;  %v4045_v13 = vld [vmem:[%s5284_s0 + $0x1] ss:$8 sm:$0x3] (!%p314_p6)  ;;  %v4051_v54 = vld [vmem:[%s5286_s2 + $0x10] sm:$0xff] (!%p314_p6) }
   0xe   : > { %s4400_s12 = smov (!%p314_p6), 113   ;;  %s4401_s15 = smov (!%p314_p6), 112   ;;  %v4527_v8 = vsub.s32 (!%p314_p6), 0, %v375_v6  ;;  %v4529_v9 = vsub.s32 (!%p314_p6), 1, %v375_v6  ;;  %vm369_vm0 = vcmp.lt.s32.totalorder (!%p314_p6), %v4525_v7, 17  ;;  %vm551_vm1 = vcmp.lt.s32.totalorder (!%p314_p6), %v4525_v7, 16 }
   0xf   : > { %s4402_s18 = smov (!%p314_p6), 111   ;;  %v4050_v26 = vld [vmem:[%s5284_s0 + $0x2] ss:$8 sm:$0x3] (!%p314_p6)  ;;  %vm657_vm4 = vcmp.lt.s32.totalorder (!%p314_p6), %v4525_v7, 15  ;;  %vm763_vm5 = vcmp.lt.s32.totalorder (!%p314_p6), %v4525_v7, 1 }
  0x10   : > { %v4539_v14 = vrot.slane (!%p314_p6), %v372_v10, %v4527_v8  ;;  %v4542_v15 = vrot.slane (!%p314_p6), %v372_v10, %v4529_v9  ;;  %v4546_v17 = vrot.slane (!%p314_p6), %v4045_v13, %v4529_v9  ;;  %v4569_v29 = vrot.slane (!%p314_p6), %v4045_v13, %v4527_v8  ;;  %v4038_v34 = vld [vmem:[%s5286_s2 + $0x20] sm:$0xff] (!%p314_p6) }
  0x11   : > { %v4578_v31 = vrot.slane (!%p314_p6), %v4050_v26, %v4529_v9  ;;  %v4055_v36 = vld [vmem:[%s5284_s0 + $0x3] ss:$8 sm:$0x3] (!%p314_p6)  ;;  %v4594_v39 = vrot.slane (!%p314_p6), %v4050_v26, %v4527_v8  ;;  %v4060_v46 = vld [vmem:[%s5284_s0 + $0x5] ss:$8 sm:$0x3] (!%p314_p6) }
  0x12   : > { %s5300_s22 = smov (!%p351_p7, %s4036_s22), 3  ;;  %v4601_v41 = vrot.slane %v4055_v36, %v4529_v9  ;;  %vm869_vm6 = vcmp.lt.s32.totalorder %v4525_v7, 127  ;;  %v4617_v49 = vrot.slane %v4055_v36, %v4527_v8  ;;  %v4624_v51 = vrot.slane %v4060_v46, %v4529_v9  ;;  %v4065_v56 = vld [vmem:[%s5284_s0 + $0x6] ss:$8 sm:$0x3]  ;;  %s4175_s19 = sshll.u32 (%p4484_p4), %s4472_s16, 4 }
  0x13   : > { %s4037_s23 = sshll.u32 %s5300_s22, 2  ;;  %vm975_vm7 = vcmp.lt.s32.totalorder %v4525_v7, 113  ;;  %v4640_v59 = vrot.slane %v4060_v46, %v4527_v8  ;;  %v4647_v61 = vrot.slane %v4065_v56, %v4529_v9  ;;  %vm1081_vm8 = vcmp.lt.s32.totalorder %v4525_v7, 112 }
  0x14   : > { %s354_s26 = scalar_lea.vmem %s5285_s1, %s4037_s23  ;;  %v4663_v6 = vrot.slane %v4065_v56, %v4527_v8  ;;  %vm1187_vm9 = vcmp.lt.s32.totalorder %v4525_v7, 111  ;;  %vm1310_vm10 = vcmask 64512   ;;  %s347_s23 = sand.u32 1, %s4384_s13   ;;  %vm2977_vm11 = vcmask 130048   ;;  %v4158_v7 = vld [vmem:[%s5292_s8 + $0x78] sm:$0xff] }
  0x15   : > { %v4494_v1 = vld [vmem:[%s354_s26] sm:$0xff]  ;;  %s4308_s24 = smul.u32 48, %s347_s23 }
  0x16   : > { %363 = vrot.lane.b32.xlu0 %v4494_v1, %s4395_s27  ;;  %v361_v2 = vcombine.high %v4494_v1, %v4494_v1  ;;  %547 = vrot.lane.b32.xlu1 %v4494_v1, %s4396_s28 }
  0x17   : > { %s4848_s25 = scalar_lea.vmem [#allocation2], %s4308_s24 }
  0x1a   : > { %365 = vrot.lane.b32.xlu0 %v361_v2, %s4395_s27  ;;  %549 = vrot.lane.b32.xlu1 %v361_v2, %s4396_s28 }
  0x1e   : > { %655 = vrot.lane.b32.xlu1 %v361_v2, %s4397_s29  ;;  %653 = vrot.lane.b32.xlu0 %v4494_v1, %s4397_s29 }
  0x22   : > { %761 = vrot.lane.b32.xlu1 %v361_v2, %s4398_s30  ;;  %759 = vrot.lane.b32.xlu0 %v4494_v1, %s4398_s30 }
  0x26   : > { %867 = vrot.lane.b32.xlu1 %v361_v2, %s4399_s11  ;;  %865 = vrot.lane.b32.xlu0 %v4494_v1, %s4399_s11 }
  0x2a   : > { %973 = vrot.lane.b32.xlu1 %v361_v2, %s4400_s12  ;;  %971 = vrot.lane.b32.xlu0 %v4494_v1, %s4400_s12 }
  0x2e   : > { %1079 = vrot.lane.b32.xlu1 %v361_v2, %s4401_s15  ;;  %1077 = vrot.lane.b32.xlu0 %v4494_v1, %s4401_s15 }
  0x32   : > { %1185 = vrot.lane.b32.xlu1 %v361_v2, %s4402_s18  ;;  %1183 = vrot.lane.b32.xlu0 %v4494_v1, %s4402_s18 }
  0x36   : > { %1292 = vperm.xlu0 %4343, %v1289_v3   ;;  %v4070_v3 = vld [vmem:[%s5284_s0 + $0x7] ss:$8 sm:$0x3] }
  0x88   : > { %v364_v11 = vpop.permute.xlu0 %363  ;;  %v548_v12 = vpop.permute.xlu1 %547 }
  0x8c   : > { %v366_v16 = vpop.permute.xlu0 %365  ;;  %v550_v18 = vpop.permute.xlu1 %549 }
  0x8d   : > { %v370_v19 = vsel %vm369_vm0, %v364_v11, %v366_v16  ;;  %v371_v20 = vsel %vm369_vm0, %v366_v16, %v364_v11  ;;  %v552_v21 = vsel %vm551_vm1, %v548_v12, %v550_v18  ;;  %v553_v30 = vsel %vm551_vm1, %v550_v18, %v548_v12  ;;  %v4061_v16 = vld [vmem:[%s5286_s2 + $0x28] sm:$0xff] }
  0x8e   : > { %v384_v22 = vmul.f32 %v4539_v14, %v371_v20  ;;  %v385_v23 = vmul.f32 %v4542_v15, %v370_v19  ;;  %v568_v25 = vmul.f32 %v4546_v17, %v552_v21  ;;  %v567_v33 = vmul.f32 %v4569_v29, %v553_v30  ;;  %v4075_v19 = vld [vmem:[%s5284_s0 + $0x10] ss:$8 sm:$0x3] }
  0x8f   : > { %v4670_v11 = vrot.slane %v4070_v3, %v4529_v9  ;;  %v4705_v30 = vrot.slane %v4075_v19, %v4527_v8 }
  0x90   : > { %4039 = vmatprep.subr.msk.mxu0 %vm391_vm2, %v385_v23  ;;  %v656_v27 = vpop.permute.xlu1 %655  ;;  %v654_v28 = vpop.permute.xlu0 %653 }
  0x91   : > { %4040 = vmatpush1.msk.msra.mxu0 %vm391_vm2, %v384_v22  ;;  %v658_v32 = vsel %vm657_vm4, %v654_v28, %v656_v27  ;;  %v659_v40 = vsel %vm657_vm4, %v656_v27, %v654_v28  ;;  %v4686_v22 = vrot.slane %v4070_v3, %v4527_v8  ;;  %v4066_v27 = vld [vmem:[%s5286_s2 + $0x30] sm:$0xff]  ;;  %v4076_v8 = vld [vmem:[%s5286_s2 + $0x40] sm:$0xff] }
  0x92   : > { %4041 = vmatmul.mubr.msk.f32.vlgmr.msra.gmra.mrb[0].mxu0 %vm387_vm3, %v386_v24  ;;  %4042 = vmatprep.subr.msk.mxu0 %vm391_vm2, %v361_v2  ;;  %v674_v35 = vmul.f32 %v4578_v31, %v658_v32  ;;  %v673_v43 = vmul.f32 %v4594_v39, %v659_v40  ;;  %v4693_v24 = vrot.slane %v4075_v19, %v4529_v9 }
  0x93   : > { %4043 = vmatpush1.msk.msra.mxu0 %vm391_vm2, %v4494_v1  ;;  %540 = vmatprep.mubr.f32.mxu0 %v4394_v0  ;;  %v4056_v1 = vld [vmem:[%s5286_s2 + $0x18] sm:$0xff] }
  0x94   : > { %4047 = vmatprep.subr.msk.mxu0 %vm391_vm2, %v568_v25  ;;  %v762_v37 = vpop.permute.xlu1 %761  ;;  %v760_v38 = vpop.permute.xlu0 %759 }
  0x95   : > { %v764_v42 = vsel %vm763_vm5, %v760_v38, %v762_v37  ;;  %v765_v50 = vsel %vm763_vm5, %v762_v37, %v760_v38 }
  0x96   : > { %v780_v45 = vmul.f32 %v4601_v41, %v764_v42  ;;  %v779_v53 = vmul.f32 %v4617_v49, %v765_v50 }
  0x98   : > { %v868_v47 = vpop.permute.xlu1 %867  ;;  %v866_v48 = vpop.permute.xlu0 %865 }
  0x99   : > { %v871_v52 = vsel %vm869_vm6, %v868_v47, %v866_v48  ;;  %v870_v60 = vsel %vm869_vm6, %v866_v48, %v868_v47 }
  0x9a   : > { %4044 = vmatmul.mubr.msk.f32.vlgmr.msra.gmra.mrb[0].mxu0 %vm387_vm3, %v4038_v34  ;;  %v886_v55 = vmul.f32 %v4624_v51, %v871_v52  ;;  %v885_v63 = vmul.f32 %v4640_v59, %v870_v60  ;;  %v1309_v52 = vld [vmem:[%s5288_s4] sm:$0xff] }
  0x9b   : > { %4048 = vmatpush1.msk.msra.mxu0 %vm391_vm2, %v567_v33  ;;  %644 = vmatprep.mubr.f32.mxu0 %v4394_v0  ;;  %v4071_v33 = vld [vmem:[%s5286_s2 + $0x38] sm:$0xff] }
  0x9c   : > { %4052 = vmatprep.subr.msk.mxu0 %vm391_vm2, %v674_v35  ;;  %v974_v57 = vpop.permute.xlu1 %973  ;;  %v972_v58 = vpop.permute.xlu0 %971 }
  0x9d   : > { %v977_v62 = vsel %vm975_vm7, %v974_v57, %v972_v58  ;;  %v976_v10 = vsel %vm975_vm7, %v972_v58, %v974_v57 }
  0x9e   : > { %v992_v2 = vmul.f32 %v4647_v61, %v977_v62  ;;  %v991_v13 = vmul.f32 %v4663_v6, %v976_v10 }
  0xa0   : > { %v1080_v4 = vpop.permute.xlu1 %1079  ;;  %v1078_v5 = vpop.permute.xlu0 %1077 }
  0xa1   : > { %v1083_v12 = vsel %vm1081_vm8, %v1080_v4, %v1078_v5  ;;  %v1082_v23 = vsel %vm1081_vm8, %v1078_v5, %v1080_v4 }
  0xa2   : > { %4049 = vmatmul.mubr.msk.f32.vlgmr.msra.gmra.mrb[0].mxu0 %vm387_vm3, %v4046_v44  ;;  %v1098_v18 = vmul.f32 %v4670_v11, %v1083_v12  ;;  %v1097_v26 = vmul.f32 %v4686_v22, %v1082_v23  ;;  %v4083_v12 = vld [vmem:[%s5288_s4 + $0x8] sm:$0xff]  ;;  %v4085_v23 = vld [vmem:[%s5288_s4 + $0x10] sm:$0xff] }
  0xa3   : > { %4053 = vmatpush1.msk.msra.mxu0 %vm391_vm2, %v673_v43  ;;  %750 = vmatprep.mubr.f32.mxu0 %v4394_v0  ;;  %v2061_v43 = vld [vmem:[%s5289_s5] sm:$0xff] }
  0xa4   : > { %4057 = vmatprep.subr.msk.mxu0 %vm391_vm2, %v780_v45  ;;  %v1186_v20 = vpop.permute.xlu1 %1185  ;;  %v1184_v21 = vpop.permute.xlu0 %1183 }
  0xa5   : > { %v1189_v25 = vsel %vm1187_vm9, %v1186_v20, %v1184_v21  ;;  %v1188_v9 = vsel %vm1187_vm9, %v1184_v21, %v1186_v20 }
  0xa6   : > { %v1204_v28 = vmul.f32 %v4693_v24, %v1189_v25  ;;  %v1203_v32 = vmul.f32 %v4705_v30, %v1188_v9 }
  0xaa   : > { %4054 = vmatmul.mubr.msk.f32.vlgmr.msra.gmra.mrb[0].mxu0 %vm387_vm3, %v4051_v54 }
  0xab   : > { %4058 = vmatpush1.msk.msra.mxu0 %vm391_vm2, %v779_v53  ;;  %856 = vmatprep.mubr.f32.mxu0 %v4394_v0 }
  0xac   : > { %4062 = vmatprep.subr.msk.mxu0 %vm391_vm2, %v886_v55 }
  0xb2   : > { %4059 = vmatmul.mubr.msk.f32.vlgmr.msra.gmra.mrb[0].mxu0 %vm387_vm3, %v4056_v1 }
  0xb3   : > { %4063 = vmatpush1.msk.msra.mxu0 %vm391_vm2, %v885_v63  ;;  %962 = vmatprep.mubr.f32.mxu0 %v4394_v0  ;;  %v4080_v63 = vld [vmem:[%s5288_s4 + $0x20] sm:$0xff] }
  0xb4   : > { %4067 = vmatprep.subr.msk.mxu0 %vm391_vm2, %v992_v2 }
  0xb5   : > { %v1293_v34 = vpop.permute.xlu0 %1292 }
  0xba   : > { %4064 = vmatmul.mubr.msk.f32.vlgmr.msra.gmra.mrb[0].mxu0 %vm387_vm3, %v4061_v16 }
  0xbb   : > { %4068 = vmatpush1.msk.msra.mxu0 %vm391_vm2, %v991_v13  ;;  %1068 = vmatprep.mubr.f32.mxu0 %v4394_v0 }
  0xbc   : > { %4072 = vmatprep.subr.msk.mxu0 %vm391_vm2, %v1098_v18 }
  0xc2   : > { %4069 = vmatmul.mubr.msk.f32.vlgmr.msra.gmra.mrb[0].mxu0 %vm387_vm3, %v4066_v27 }
  0xc3   : > { %4073 = vmatpush1.msk.msra.mxu0 %vm391_vm2, %v1097_v26  ;;  %1174 = vmatprep.mubr.f32.mxu0 %v4394_v0 }
  0xc4   : > { %4077 = vmatprep.subr.msk.mxu0 %vm391_vm2, %v1204_v28 }
  0xca   : > { %4074 = vmatmul.mubr.msk.f32.vlgmr.msra.gmra.mrb[0].mxu0 %vm387_vm3, %v4071_v33  ;;  %v4087_v33 = vld [vmem:[%s5288_s4 + $0x18] sm:$0xff] }
  0xcb   : > { %4078 = vmatpush1.msk.msra.mxu0 %vm391_vm2, %v1203_v32  ;;  %1280 = vmatprep.mubr.f32.mxu0 %v4394_v0 }
  0xd2   : > { %4079 = vmatmul.mubr.msk.f32.vlgmr.msra.gmra.mrb[0].mxu0 %vm387_vm3, %v4076_v8 }
  0xd3   : > { %2154 = vmatprep.mubr.f32.mxu0 %v4394_v0 }
 0x1a5   : > { %v1282_v35 = vpop.f32.mrb[0].mxu0 }
 0x1a6   : > { %v1295_v36 = vadd.f32 %v1293_v34, %v1282_v35  ;;  %v1284_v37 = vpop.f32.mrb[1].mxu0 }
 0x1a7   : > { %v1296_v40 = vadd.f32 %v1293_v34, %v1284_v37 }
 0x1a8   : > { %v1297_v38 = vmax.f32 %v1295_v36, 0.0 }
 0x1a9   : > { %v1298_v42 = vmax.f32 %v1296_v40, 0.0  ;;  %v4089_v40 = vld [vmem:[%s5288_s4 + $0x28] sm:$0xff] }
 0x1aa   : > { %1459 = vrot.lane.b32.xlu0 %v1297_v38, %s4396_s28  ;;  %1301 = vrot.lane.b32.xlu1 %v1297_v38, %s4395_s27 }
 0x1ae   : > { %1545 = vrot.lane.b32.xlu0 %v1297_v38, %s4397_s29  ;;  %1303 = vrot.lane.b32.xlu1 %v1298_v42, %s4395_s27 }
 0x1b2   : > { %1631 = vrot.lane.b32.xlu0 %v1297_v38, %s4398_s30  ;;  %1461 = vrot.lane.b32.xlu1 %v1298_v42, %s4396_s28 }
 0x1b6   : > { %1717 = vrot.lane.b32.xlu0 %v1297_v38, %s4399_s11  ;;  %1547 = vrot.lane.b32.xlu1 %v1298_v42, %s4397_s29 }
 0x1ba   : > { %1803 = vrot.lane.b32.xlu0 %v1297_v38, %s4400_s12  ;;  %1633 = vrot.lane.b32.xlu1 %v1298_v42, %s4398_s30 }
 0x1be   : > { %1889 = vrot.lane.b32.xlu0 %v1297_v38, %s4401_s15  ;;  %1719 = vrot.lane.b32.xlu1 %v1298_v42, %s4399_s11 }
 0x1c2   : > { %1975 = vrot.lane.b32.xlu0 %v1297_v38, %s4402_s18  ;;  %1805 = vrot.lane.b32.xlu1 %v1298_v42, %s4400_s12 }
 0x1c6   : > { %2064 = vperm.xlu0 %4343, %v2061_v43   ;;  %1891 = vrot.lane.b32.xlu1 %v1298_v42, %s4401_s15 }
 0x1ca   : > { %1977 = vrot.lane.b32.xlu1 %v1298_v42, %s4402_s18 }
 0x21c   : > { %v1302_v44 = vpop.permute.xlu1 %1301  ;;  %v1460_v53 = vpop.permute.xlu0 %1459 }
 0x220   : > { %v1304_v45 = vpop.permute.xlu1 %1303  ;;  %v1546_v58 = vpop.permute.xlu0 %1545 }
 0x221   : > { %v1306_v46 = vsel %vm369_vm0, %v1304_v45, %v1302_v44  ;;  %v1305_v47 = vsel %vm369_vm0, %v1302_v44, %v1304_v45 }
 0x222   : > { %v1308_v48 = vmul.f32 %v1305_v47, %v4542_v15  ;;  %v1307_v50 = vmul.f32 %v1306_v46, %v4539_v14 }
 0x224   : > { %1314 = vmatprep.subr.mxu1 %v1308_v48  ;;  %v1462_v54 = vpop.permute.xlu1 %1461  ;;  %v1632_v4 = vpop.permute.xlu0 %1631  ;;  %v4091_v48 = vld [vmem:[%s5288_s4 + $0x30] sm:$0xff] }
 0x225   : > { %v1463_v55 = vsel %vm551_vm1, %v1460_v53, %v1462_v54  ;;  %1315 = vmatpush1.msra.mxu1 %v1307_v50  ;;  %v1464_v60 = vsel %vm551_vm1, %v1462_v54, %v1460_v53  ;;  %v4093_v54 = vld [vmem:[%s5288_s4 + $0x38] sm:$0xff] }
 0x226   : > { %v1466_v56 = vmul.f32 %v1463_v55, %v4546_v17  ;;  %4081 = vmatmul.mubr.msk.f32.vlgmr.msra.gmra.mrb[0].mxu1 %vm1310_vm10, %v1309_v52  ;;  %1388 = vmatprep.subr.mxu1 %v1298_v42  ;;  %v1465_v1 = vmul.f32 %v1464_v60, %v4569_v29 }
 0x227   : > { %1389 = vmatpush1.msra.mxu1 %v1297_v38  ;;  %1452 = vmatprep.mubr.f32.mxu1 %v4394_v0 }
 0x228   : > { %1472 = vmatprep.subr.mxu1 %v1466_v56  ;;  %v1548_v57 = vpop.permute.xlu1 %1547  ;;  %v1718_v19 = vpop.permute.xlu0 %1717  ;;  %v4095_v56 = vld [vmem:[%s5288_s4 + $0x40] sm:$0xff] }
 0x229   : > { %v1549_v62 = vsel %vm657_vm4, %v1546_v58, %v1548_v57  ;;  %v1550_v5 = vsel %vm657_vm4, %v1548_v57, %v1546_v58 }
 0x22a   : > { %v1552_v2 = vmul.f32 %v1549_v62, %v4578_v31  ;;  %v1551_v13 = vmul.f32 %v1550_v5, %v4594_v39 }
 0x22c   : > { %v1634_v3 = vpop.permute.xlu1 %1633  ;;  %v1804_v28 = vpop.permute.xlu0 %1803 }
 0x22d   : > { %v1635_v10 = vsel %vm763_vm5, %v1632_v4, %v1634_v3  ;;  %v1636_v20 = vsel %vm763_vm5, %v1634_v3, %v1632_v4 }
 0x22e   : > { %4082 = vmatmul.mubr.msk.f32.vlgmr.msra.gmra.mrb[0].mxu1 %vm1310_vm10, %v4080_v63  ;;  %v1638_v16 = vmul.f32 %v1635_v10, %v4601_v41  ;;  %v1637_v25 = vmul.f32 %v1636_v20, %v4617_v49  ;;  %v2936_v20 = vld [vmem:[%s5291_s7] sm:$0xff] }
 0x22f   : > { %1473 = vmatpush1.msra.mxu1 %v1465_v1  ;;  %1536 = vmatprep.mubr.f32.mxu1 %v4394_v0 }
 0x230   : > { %1558 = vmatprep.subr.mxu1 %v1552_v2  ;;  %v1720_v18 = vpop.permute.xlu1 %1719  ;;  %v1890_v36 = vpop.permute.xlu0 %1889 }
 0x231   : > { %v1722_v21 = vsel %vm869_vm6, %v1720_v18, %v1718_v19  ;;  %v1721_v9 = vsel %vm869_vm6, %v1718_v19, %v1720_v18  ;;  %v2937_v19 = vld [vmem:[%s5291_s7 + $0x8] sm:$0xff] }
 0x232   : > { %v1724_v26 = vmul.f32 %v1722_v21, %v4624_v51  ;;  %v1723_v8 = vmul.f32 %v1721_v9, %v4640_v59 }
 0x234   : > { %v1806_v27 = vpop.permute.xlu1 %1805  ;;  %v1976_v45 = vpop.permute.xlu0 %1975 }
 0x235   : > { %v1808_v32 = vsel %vm975_vm7, %v1806_v27, %v1804_v28  ;;  %v1807_v37 = vsel %vm975_vm7, %v1804_v28, %v1806_v27 }
 0x236   : > { %4084 = vmatmul.mubr.msk.f32.vlgmr.msra.gmra.mrb[0].mxu1 %vm1310_vm10, %v4083_v12  ;;  %v1810_v34 = vmul.f32 %v1808_v32, %v4647_v61  ;;  %v1809_v42 = vmul.f32 %v1807_v37, %v4663_v6  ;;  %v2082_v32 = vld [vmem:[%s5290_s6] sm:$0xff] }
 0x237   : > { %1559 = vmatpush1.msra.mxu1 %v1551_v13  ;;  %1622 = vmatprep.mubr.f32.mxu1 %v4394_v0 }
 0x238   : > { %1644 = vmatprep.subr.mxu1 %v1638_v16  ;;  %v1892_v35 = vpop.permute.xlu1 %1891 }
 0x239   : > { %v1894_v38 = vsel %vm1081_vm8, %v1892_v35, %v1890_v36  ;;  %v1893_v46 = vsel %vm1081_vm8, %v1890_v36, %v1892_v35  ;;  %v2083_v35 = vld [vmem:[%s5290_s6 + $0x8] sm:$0xff] }
 0x23a   : > { %v1896_v43 = vmul.f32 %v1894_v38, %v4670_v11  ;;  %v1895_v50 = vmul.f32 %v1893_v46, %v4686_v22 }
 0x23c   : > { %v1978_v44 = vpop.permute.xlu1 %1977 }
 0x23d   : > { %v1980_v47 = vsel %vm1187_vm9, %v1978_v44, %v1976_v45  ;;  %v1979_v53 = vsel %vm1187_vm9, %v1976_v45, %v1978_v44  ;;  %v4098_v45 = vld [vmem:[%s5290_s6 + $0x48] sm:$0xff] }
 0x23e   : > { %4086 = vmatmul.mubr.msk.f32.vlgmr.msra.gmra.mrb[0].mxu1 %vm1310_vm10, %v4085_v23  ;;  %v1982_v52 = vmul.f32 %v1980_v47, %v4693_v24  ;;  %v1981_v55 = vmul.f32 %v1979_v53, %v4705_v30 }
 0x23f   : > { %1645 = vmatpush1.msra.mxu1 %v1637_v25  ;;  %1708 = vmatprep.mubr.f32.mxu1 %v4394_v0 }
 0x240   : > { %1730 = vmatprep.subr.mxu1 %v1724_v26 }
 0x245   : > { %v2065_v57 = vpop.permute.xlu0 %2064 }
 0x246   : > { %4088 = vmatmul.mubr.msk.f32.vlgmr.msra.gmra.mrb[0].mxu1 %vm1310_vm10, %v4087_v33 }
 0x247   : > { %1731 = vmatpush1.msra.mxu1 %v1723_v8  ;;  %1794 = vmatprep.mubr.f32.mxu1 %v4394_v0 }
 0x248   : > { %1816 = vmatprep.subr.mxu1 %v1810_v34 }
 0x24e   : > { %4090 = vmatmul.mubr.msk.f32.vlgmr.msra.gmra.mrb[0].mxu1 %vm1310_vm10, %v4089_v40 }
 0x24f   : > { %1817 = vmatpush1.msra.mxu1 %v1809_v42  ;;  %1880 = vmatprep.mubr.f32.mxu1 %v4394_v0  ;;  %v4097_v42 = vld [vmem:[%s5290_s6 + $0x40] sm:$0xff] }
 0x250   : > { %1902 = vmatprep.subr.mxu1 %v1896_v43 }
 0x256   : > { %4092 = vmatmul.mubr.msk.f32.vlgmr.msra.gmra.mrb[0].mxu1 %vm1310_vm10, %v4091_v48 }
 0x257   : > { %1903 = vmatpush1.msra.mxu1 %v1895_v50  ;;  %1966 = vmatprep.mubr.f32.mxu1 %v4394_v0 }
 0x258   : > { %1988 = vmatprep.subr.mxu1 %v1982_v52  ;;  %v4103_v52 = vld [vmem:[%s5290_s6 + $0x10] sm:$0xff] }
 0x25e   : > { %4094 = vmatmul.mubr.msk.f32.vlgmr.msra.gmra.mrb[0].mxu1 %vm1310_vm10, %v4093_v54 }
 0x25f   : > { %1989 = vmatpush1.msra.mxu1 %v1981_v55  ;;  %2052 = vmatprep.mubr.f32.mxu1 %v4394_v0  ;;  %v4104_v55 = vld [vmem:[%s5290_s6 + $0x18] sm:$0xff] }
 0x266   : > { %4096 = vmatmul.mubr.msk.f32.vlgmr.msra.gmra.mrb[0].mxu1 %vm1310_vm10, %v4095_v56 }
 0x267   : > { %3048 = vmatprep.mubr.f32.mxu1 %v4394_v0 }
 0x339   : > { %v2054_v58 = vpop.f32.mrb[0].mxu1 }
 0x33a   : > { %v2067_v60 = vadd.f32 %v2065_v57, %v2054_v58  ;;  %v2056_v62 = vpop.f32.mrb[1].mxu1 }
 0x33b   : > { %v2068_v63 = vadd.f32 %v2065_v57, %v2056_v62  ;;  %v4107_v62 = vld [vmem:[%s5290_s6 + $0x20] sm:$0xff] }
 0x33c   : > { %v2069_v1 = vmax.f32 %v2067_v60, 0.0  ;;  %v4165_v2 = vmul.f32 -1.442695, %v2067_v60 }
 0x33d   : > { %v2070_v3 = vmax.f32 %v2068_v63, 0.0  ;;  %v4166_v4 = vmul.f32 -1.442695, %v2068_v63 }
 0x33e   : > { %4346 = vpow2.f32 %v4165_v2  ;;  %2074 = vrot.lane.b32.xlu1 %v2069_v1, %s4395_s27  ;;  %v4108_v2 = vld [vmem:[%s5290_s6 + $0x28] sm:$0xff] }
 0x33f   : > { %4348 = vpow2.f32 %v4166_v4  ;;  %2076 = vrot.lane.b32.xlu0 %v2070_v3, %s4395_s27 }
 0x342   : > { %2250 = vrot.lane.b32.xlu1 %v2069_v1, %s4396_s28 }
 0x343   : > { %2252 = vrot.lane.b32.xlu0 %v2070_v3, %s4396_s28 }
 0x346   : > { %2348 = vrot.lane.b32.xlu1 %v2069_v1, %s4397_s29 }
 0x347   : > { %2350 = vrot.lane.b32.xlu0 %v2070_v3, %s4397_s29 }
 0x348   : > { %v4347_v5 = vpop.eup %4346 }
 0x349   : > { %v4349_v10 = vpop.eup %4348  ;;  %v3908_v12 = vadd.f32 1.0, %v4347_v5 }
 0x34a   : > { %v3909_v13 = vadd.f32 1.0, %v4349_v10  ;;  %2446 = vrot.lane.b32.xlu1 %v2069_v1, %s4398_s30 }
 0x34b   : > { %4350 = vrcp.f32 %v3908_v12  ;;  %2448 = vrot.lane.b32.xlu0 %v2070_v3, %s4398_s30  ;;  %v4111_v12 = vld [vmem:[%s5290_s6 + $0x30] sm:$0xff] }
 0x34c   : > { %4352 = vrcp.f32 %v3909_v13 }
 0x34e   : > { %2544 = vrot.lane.b32.xlu1 %v2069_v1, %s4399_s11 }
 0x34f   : > { %2546 = vrot.lane.b32.xlu0 %v2070_v3, %s4399_s11 }
 0x352   : > { %2642 = vrot.lane.b32.xlu1 %v2069_v1, %s4400_s12 }
 0x353   : > { %2644 = vrot.lane.b32.xlu0 %v2070_v3, %s4400_s12 }
 0x355   : > { %v4351_v16 = vpop.eup %4350 }
 0x356   : > { %v4353_v18 = vpop.eup %4352  ;;  %3938 = vst [vmem:[%s4848_s25] sm:$0xff] %v4351_v16  ;;  %2740 = vrot.lane.b32.xlu1 %v2069_v1, %s4401_s15 }
 0x357   : > { %3939 = vst [vmem:[%s4848_s25 + $0x8] sm:$0xff] %v4353_v18  ;;  %2742 = vrot.lane.b32.xlu0 %v2070_v3, %s4401_s15  ;;  %v4112_v18 = vld [vmem:[%s5290_s6 + $0x38] sm:$0xff] }
 0x35a   : > { %2838 = vrot.lane.b32.xlu1 %v2069_v1, %s4402_s18 }
 0x35b   : > { %2840 = vrot.lane.b32.xlu0 %v2070_v3, %s4402_s18 }
 0x35e   : > { %2940 = vperm.xlu1 %4344, %v2936_v20  }
 0x35f   : > { %2945 = vperm.xlu0 %4343, %v2937_v19  }
 0x3b0   : > { %v2075_v21 = vpop.permute.xlu1 %2074 }
 0x3b1   : > { %v2077_v23 = vpop.permute.xlu0 %2076 }
 0x3b2   : > { %v2078_v25 = vsel %vm369_vm0, %v2075_v21, %v2077_v23  ;;  %v2079_v26 = vsel %vm369_vm0, %v2077_v23, %v2075_v21 }
 0x3b3   : > { %v2080_v27 = vmul.f32 %v2079_v26, %v4539_v14  ;;  %v2081_v28 = vmul.f32 %v2078_v25, %v4542_v15  ;;  %v4115_v25 = vld [vmem:[%s5290_s6 + $0x50] sm:$0xff] }
 0x3b4   : > { %v2251_v9 = vpop.permute.xlu1 %2250 }
 0x3b5   : > { %2090 = vmatprep.subr.mxu0 %v2081_v28  ;;  %v2253_v33 = vpop.permute.xlu0 %2252  ;;  %v4116_v28 = vld [vmem:[%s5290_s6 + $0x58] sm:$0xff] }
 0x3b6   : > { %v2254_v8 = vsel %vm551_vm1, %v2251_v9, %v2253_v33  ;;  %2091 = vmatpush1.msra.mxu0 %v2080_v27  ;;  %v2255_v38 = vsel %vm551_vm1, %v2253_v33, %v2251_v9 }
 0x3b7   : > { %v2257_v34 = vmul.f32 %v2254_v8, %v4546_v17  ;;  %4099 = vmatmul.mubr.msk.f32.vlgmr.msra.gmra.mrb[2].mxu0 %vm1310_vm10, %v2082_v32  ;;  %2173 = vmatprep.subr.mxu0 %v2070_v3  ;;  %v2256_v43 = vmul.f32 %v2255_v38, %v4569_v29 }
 0x3b8   : > { %2174 = vmatpush1.msra.mxu0 %v2069_v1  ;;  %2160 = vmatprep.mubr.f32.mxu0 %v4394_v0  ;;  %v2349_v36 = vpop.permute.xlu1 %2348 }
 0x3b9   : > { %2267 = vmatprep.subr.mxu0 %v2257_v34  ;;  %v2351_v37 = vpop.permute.xlu0 %2350  ;;  %v4119_v34 = vld [vmem:[%s5290_s6 + $0x60] sm:$0xff] }
 0x3ba   : > { %v2352_v40 = vsel %vm657_vm4, %v2349_v36, %v2351_v37  ;;  %v2353_v48 = vsel %vm657_vm4, %v2351_v37, %v2349_v36  ;;  %v4120_v37 = vld [vmem:[%s5290_s6 + $0x68] sm:$0xff] }
 0x3bb   : > { %4100 = vmatmul.mubr.msk.f32.gmra.mrb[4].mxu0 %vm1310_vm10, %v2083_v35  ;;  %v2355_v44 = vmul.f32 %v2352_v40, %v4578_v31  ;;  %v2354_v53 = vmul.f32 %v2353_v48, %v4594_v39  ;;  %v4123_v40 = vld [vmem:[%s5290_s6 + $0x70] sm:$0xff] }
 0x3bc   : > { %2237 = vmatprep.mubr.f32.mxu0 %v4394_v0  ;;  %v2447_v46 = vpop.permute.xlu1 %2446 }
 0x3bd   : > { %v2449_v47 = vpop.permute.xlu0 %2448 }
 0x3be   : > { %v2450_v50 = vsel %vm763_vm5, %v2447_v46, %v2449_v47  ;;  %v2451_v58 = vsel %vm763_vm5, %v2449_v47, %v2447_v46 }
 0x3bf   : > { %4101 = vmatmul.mubr.msk.f32.vlgmr.msra.gmra.mrb[2].mxu0 %vm1310_vm10, %v4097_v42  ;;  %v2453_v54 = vmul.f32 %v2450_v50, %v4601_v41  ;;  %v2452_v63 = vmul.f32 %v2451_v58, %v4617_v49 }
 0x3c0   : > { %2268 = vmatpush1.msra.mxu0 %v2256_v43  ;;  %2243 = vmatprep.mubr.f32.mxu0 %v4394_v0  ;;  %v2545_v56 = vpop.permute.xlu1 %2544  ;;  %v4124_v43 = vld [vmem:[%s5290_s6 + $0x78] sm:$0xff] }
 0x3c1   : > { %2365 = vmatprep.subr.mxu0 %v2355_v44  ;;  %v2547_v57 = vpop.permute.xlu0 %2546  ;;  %v4127_v44 = vld [vmem:[%s5290_s6 + $0x80] sm:$0xff] }
 0x3c2   : > { %v2549_v60 = vsel %vm869_vm6, %v2547_v57, %v2545_v56  ;;  %v2548_v5 = vsel %vm869_vm6, %v2545_v56, %v2547_v57 }
 0x3c3   : > { %4102 = vmatmul.mubr.msk.f32.gmra.mrb[4].mxu0 %vm1310_vm10, %v4098_v45  ;;  %v2551_v1 = vmul.f32 %v2549_v60, %v4624_v51  ;;  %v2550_v13 = vmul.f32 %v2548_v5, %v4640_v59  ;;  %v4128_v45 = vld [vmem:[%s5290_s6 + $0x88] sm:$0xff] }
 0x3c4   : > { %2331 = vmatprep.mubr.f32.mxu0 %v4394_v0  ;;  %v2643_v3 = vpop.permute.xlu1 %2642 }
 0x3c5   : > { %v2645_v4 = vpop.permute.xlu0 %2644 }
 0x3c6   : > { %v2647_v10 = vsel %vm975_vm7, %v2645_v4, %v2643_v3  ;;  %v2646_v21 = vsel %vm975_vm7, %v2643_v3, %v2645_v4  ;;  %v3886_v3 = vld [vmem:[%s5293_s9] sm:$0xff]  ;;  %v3887_v4 = vld [vmem:[%s5293_s9 + $0x8] sm:$0xff] }
 0x3c7   : > { %4105 = vmatmul.mubr.msk.f32.vlgmr.msra.gmra.mrb[2].mxu0 %vm1310_vm10, %v4103_v52  ;;  %v2649_v16 = vmul.f32 %v2647_v10, %v4647_v61  ;;  %v2648_v26 = vmul.f32 %v2646_v21, %v4663_v6 }
 0x3c8   : > { %2366 = vmatpush1.msra.mxu0 %v2354_v53  ;;  %2337 = vmatprep.mubr.f32.mxu0 %v4394_v0  ;;  %v2741_v19 = vpop.permute.xlu1 %2740 }
 0x3c9   : > { %2463 = vmatprep.subr.mxu0 %v2453_v54  ;;  %v2743_v20 = vpop.permute.xlu0 %2742 }
 0x3ca   : > { %v2745_v23 = vsel %vm1081_vm8, %v2743_v20, %v2741_v19  ;;  %v2744_v33 = vsel %vm1081_vm8, %v2741_v19, %v2743_v20 }
 0x3cb   : > { %4106 = vmatmul.mubr.msk.f32.gmra.mrb[4].mxu0 %vm1310_vm10, %v4104_v55  ;;  %v2747_v27 = vmul.f32 %v2745_v23, %v4670_v11  ;;  %v2746_v35 = vmul.f32 %v2744_v33, %v4686_v22 }
 0x3cc   : > { %2429 = vmatprep.mubr.f32.mxu0 %v4394_v0  ;;  %v2839_v9 = vpop.permute.xlu1 %2838 }
 0x3cd   : > { %v2841_v32 = vpop.permute.xlu0 %2840 }
 0x3ce   : > { %v2843_v8 = vsel %vm1187_vm9, %v2841_v32, %v2839_v9  ;;  %v2842_v38 = vsel %vm1187_vm9, %v2839_v9, %v2841_v32 }
 0x3cf   : > { %4109 = vmatmul.mubr.msk.f32.vlgmr.msra.gmra.mrb[2].mxu0 %vm1310_vm10, %v4107_v62  ;;  %v2845_v36 = vmul.f32 %v2843_v8, %v4693_v24  ;;  %v2844_v42 = vmul.f32 %v2842_v38, %v4705_v30 }
 0x3d0   : > { %2464 = vmatpush1.msra.mxu0 %v2452_v63  ;;  %2435 = vmatprep.mubr.f32.mxu0 %v4394_v0 }
 0x3d1   : > { %2561 = vmatprep.subr.mxu0 %v2551_v1 }
 0x3d3   : > { %4110 = vmatmul.mubr.msk.f32.gmra.mrb[4].mxu0 %vm1310_vm10, %v4108_v2 }
 0x3d4   : > { %2527 = vmatprep.mubr.f32.mxu0 %v4394_v0 }
 0x3d7   : > { %4113 = vmatmul.mubr.msk.f32.vlgmr.msra.gmra.mrb[2].mxu0 %vm1310_vm10, %v4111_v12 }
 0x3d8   : > { %2562 = vmatpush1.msra.mxu0 %v2550_v13  ;;  %2533 = vmatprep.mubr.f32.mxu0 %v4394_v0 }
 0x3d9   : > { %2659 = vmatprep.subr.mxu0 %v2649_v16 }
 0x3db   : > { %4114 = vmatmul.mubr.msk.f32.gmra.mrb[4].mxu0 %vm1310_vm10, %v4112_v18 }
 0x3dc   : > { %2625 = vmatprep.mubr.f32.mxu0 %v4394_v0 }
 0x3dd   : > { %v2941_v46 = vpop.permute.xlu1 %2940 }
 0x3de   : > { %v2946_v54 = vpop.permute.xlu0 %2945 }
 0x3df   : > { %4117 = vmatmul.mubr.msk.f32.vlgmr.msra.gmra.mrb[2].mxu0 %vm1310_vm10, %v4115_v25 }
 0x3e0   : > { %2660 = vmatpush1.msra.mxu0 %v2648_v26  ;;  %2631 = vmatprep.mubr.f32.mxu0 %v4394_v0 }
 0x3e1   : > { %2757 = vmatprep.subr.mxu0 %v2747_v27 }
 0x3e3   : > { %4118 = vmatmul.mubr.msk.f32.gmra.mrb[4].mxu0 %vm1310_vm10, %v4116_v28 }
 0x3e4   : > { %2723 = vmatprep.mubr.f32.mxu0 %v4394_v0 }
 0x3e7   : > { %4121 = vmatmul.mubr.msk.f32.vlgmr.msra.gmra.mrb[2].mxu0 %vm1310_vm10, %v4119_v34  ;;  %v2975_v34 = vld [vmem:[%s5292_s8] sm:$0xff] }
 0x3e8   : > { %2758 = vmatpush1.msra.mxu0 %v2746_v35  ;;  %2729 = vmatprep.mubr.f32.mxu0 %v4394_v0 }
 0x3e9   : > { %2855 = vmatprep.subr.mxu0 %v2845_v36 }
 0x3eb   : > { %4122 = vmatmul.mubr.msk.f32.gmra.mrb[4].mxu0 %vm1310_vm10, %v4120_v37 }
 0x3ec   : > { %2821 = vmatprep.mubr.f32.mxu0 %v4394_v0 }
 0x3ef   : > { %4125 = vmatmul.mubr.msk.f32.vlgmr.msra.gmra.mrb[2].mxu0 %vm1310_vm10, %v4123_v40  ;;  %v2976_v40 = vld [vmem:[%s5292_s8 + $0x8] sm:$0xff] }
 0x3f0   : > { %2856 = vmatpush1.msra.mxu0 %v2844_v42  ;;  %2827 = vmatprep.mubr.f32.mxu0 %v4394_v0 }
 0x3f3   : > { %4126 = vmatmul.mubr.msk.f32.gmra.mrb[4].mxu0 %vm1310_vm10, %v4124_v43 }
 0x3f4   : > { %2919 = vmatprep.mubr.f32.mxu0 %v4394_v0 }
 0x3f7   : > { %4129 = vmatmul.mubr.msk.f32.vlgmr.msra.gmra.mrb[2].mxu0 %vm1310_vm10, %v4127_v44 }
 0x3f8   : > { %2925 = vmatprep.mubr.f32.mxu0 %v4394_v0 }
 0x3fb   : > { %4130 = vmatmul.mubr.msk.f32.gmra.mrb[4].mxu0 %vm1310_vm10, %v4128_v45 }
 0x4ca   : > { %v2921_v47 = vpop.f32.mrb[2].mxu0 }
 0x4cb   : > { %v2948_v48 = vadd.f32 %v2941_v46, %v2921_v47  ;;  %v2923_v50 = vpop.f32.mrb[3].mxu0 }
 0x4cc   : > { %v2949_v53 = vadd.f32 %v2941_v46, %v2923_v50 }
 0x4cd   : > { %v4999_v52 = vmax.f32 %v2948_v48, 0.0  ;;  %v4131_v48 = vld [vmem:[%s5292_s8 + $0x40] sm:$0xff] }
 0x4ce   : > { %v2927_v55 = vpop.f32.mrb[4].mxu0  ;;  %v5003_v60 = vmax.f32 %v2949_v53, 0.0 }
 0x4cf   : > { %v2950_v56 = vadd.f32 %v2946_v54, %v2927_v55  ;;  %2959 = vrot.lane.b32.xlu1 %v4999_v52, %s4395_s27  ;;  %v2929_v57 = vpop.f32.mrb[5].mxu0 }
 0x4d0   : > { %v2951_v58 = vadd.f32 %v2946_v54, %v2929_v57  ;;  %v4132_v57 = vld [vmem:[%s5292_s8 + $0x48] sm:$0xff] }
 0x4d1   : > { %v5005_v62 = vmax.f32 %v2950_v56, 0.0 }
 0x4d2   : > { %v2955_v63 = vmax.f32 %v2951_v58, 0.0 }
 0x4d3   : > { %2963 = vrot.lane.b32.xlu1 %v5003_v60, %s4395_s27  ;;  %2961 = vrot.lane.b32.xlu0 %v5005_v62, %s4395_s27  ;;  %v4182_v1 = vpack.c.bf16 %v5005_v62, %v4999_v52 }
 0x4d4   : > { %v4180_v2 = vpack.c.bf16 %v2955_v63, %v5003_v60 }
 0x4d7   : > { %3144 = vrot.lane.b32.xlu1 %v4999_v52, %s4396_s28  ;;  %2965 = vrot.lane.b32.xlu0 %v2955_v63, %s4395_s27 }
 0x4db   : > { %3148 = vrot.lane.b32.xlu1 %v5003_v60, %s4396_s28  ;;  %3146 = vrot.lane.b32.xlu0 %v5005_v62, %s4396_s28 }
 0x4df   : > { %3250 = vrot.lane.b32.xlu1 %v4999_v52, %s4397_s29  ;;  %3150 = vrot.lane.b32.xlu0 %v2955_v63, %s4396_s28  ;;  %s3953_s28 = scalar_lea.vmem (%p4484_p4), %s5294_s10, %s4175_s19 }
 0x4e3   : > { %3254 = vrot.lane.b32.xlu1 %v5003_v60, %s4397_s29  ;;  %3252 = vrot.lane.b32.xlu0 %v5005_v62, %s4397_s29 }
 0x4e7   : > { %3356 = vrot.lane.b32.xlu1 %v4999_v52, %s4398_s30  ;;  %3256 = vrot.lane.b32.xlu0 %v2955_v63, %s4397_s29 }
 0x4eb   : > { %3360 = vrot.lane.b32.xlu1 %v5003_v60, %s4398_s30  ;;  %3358 = vrot.lane.b32.xlu0 %v5005_v62, %s4398_s30 }
 0x4ef   : > { %3462 = vrot.lane.b32.xlu1 %v4999_v52, %s4399_s11  ;;  %3362 = vrot.lane.b32.xlu0 %v2955_v63, %s4398_s30 }
 0x4f3   : > { %3466 = vrot.lane.b32.xlu1 %v5003_v60, %s4399_s11  ;;  %3464 = vrot.lane.b32.xlu0 %v5005_v62, %s4399_s11 }
 0x4f7   : > { %3568 = vrot.lane.b32.xlu1 %v4999_v52, %s4400_s12  ;;  %3468 = vrot.lane.b32.xlu0 %v2955_v63, %s4399_s11 }
 0x4fb   : > { %3572 = vrot.lane.b32.xlu1 %v5003_v60, %s4400_s12  ;;  %3570 = vrot.lane.b32.xlu0 %v5005_v62, %s4400_s12 }
 0x4ff   : > { %3674 = vrot.lane.b32.xlu1 %v4999_v52, %s4401_s15  ;;  %3574 = vrot.lane.b32.xlu0 %v2955_v63, %s4400_s12 }
 0x503   : > { %3678 = vrot.lane.b32.xlu1 %v5003_v60, %s4401_s15  ;;  %3676 = vrot.lane.b32.xlu0 %v5005_v62, %s4401_s15 }
 0x507   : > { %3780 = vrot.lane.b32.xlu1 %v4999_v52, %s4402_s18  ;;  %3680 = vrot.lane.b32.xlu0 %v2955_v63, %s4401_s15 }
 0x50b   : > { %3784 = vrot.lane.b32.xlu1 %v5003_v60, %s4402_s18  ;;  %3782 = vrot.lane.b32.xlu0 %v5005_v62, %s4402_s18 }
 0x50f   : > { %3890 = vperm.xlu1 %4344, %v3886_v3   ;;  %3786 = vrot.lane.b32.xlu0 %v2955_v63, %s4402_s18  ;;  %v4137_v3 = vld [vmem:[%s5292_s8 + $0x10] sm:$0xff] }
 0x513   : > { %3895 = vperm.xlu0 %4343, %v3887_v4  }
 0x541   : > { %v2960_v5 = vpop.permute.xlu1 %2959 }
 0x545   : > { %v2964_v10 = vpop.permute.xlu1 %2963  ;;  %v2962_v12 = vpop.permute.xlu0 %2961 }
 0x546   : > { %v2967_v13 = vsel %vm369_vm0, %v2960_v5, %v2964_v10  ;;  %v2969_v16 = vsel %vm369_vm0, %v2964_v10, %v2960_v5 }
 0x547   : > { %v2971_v23 = vmul.f32 %v2969_v16, %v4539_v14  ;;  %v2972_v25 = vmul.f32 %v2967_v13, %v4542_v15 }
 0x549   : > { %v3145_v18 = vpop.permute.xlu1 %3144  ;;  %v2966_v19 = vpop.permute.xlu0 %2965 }
 0x54a   : > { %v2968_v20 = vsel %vm369_vm0, %v2962_v12, %v2966_v19  ;;  %v2970_v21 = vsel %vm369_vm0, %v2966_v19, %v2962_v12 }
 0x54b   : > { %v2973_v26 = vmul.f32 %v2970_v21, %v4539_v14  ;;  %v2974_v27 = vmul.f32 %v2968_v20, %v4542_v15 }
 0x54d   : > { %v4178_v28 = vpack.c.bf16 %v2973_v26, %v2971_v23  ;;  %v3149_v9 = vpop.permute.xlu1 %3148  ;;  %v3147_v32 = vpop.permute.xlu0 %3146  ;;  %v4176_v33 = vpack.c.bf16 %v2974_v27, %v2972_v25  ;;  %v4141_v27 = vld [vmem:[%s5292_s8 + $0x20] sm:$0xff] }
 0x54e   : > { %v3152_v8 = vsel %vm551_vm1, %v3145_v18, %v3149_v9  ;;  %v3154_v42 = vsel %vm551_vm1, %v3149_v9, %v3145_v18  ;;  %v4138_v18 = vld [vmem:[%s5292_s8 + $0x18] sm:$0xff] }
 0x54f   : > { %4177 = vmatprep.subr.bf16.mxu1 %v4176_v33  ;;  %v3157_v15 = vmul.f32 %v3152_v8, %v4546_v17  ;;  %v3156_v46 = vmul.f32 %v3154_v42, %v4569_v29  ;;  %v4145_v42 = vld [vmem:[%s5292_s8 + $0x30] sm:$0xff] }
 0x550   : > { %4179 = vmatpush1.bf16.msra.mxu1 %v4178_v28 }
 0x551   : > { %v3251_v35 = vpop.permute.xlu1 %3250  ;;  %4181 = vmatprep.subr.bf16.mxu1 %v4180_v2  ;;  %v3151_v36 = vpop.permute.xlu0 %3150 }
 0x552   : > { %v3153_v14 = vsel %vm551_vm1, %v3147_v32, %v3151_v36  ;;  %v3155_v37 = vsel %vm551_vm1, %v3151_v36, %v3147_v32 }
 0x553   : > { %v3159_v38 = vmul.f32 %v3153_v14, %v4546_v17  ;;  %4133 = vmatmul.mubr.msk.f32.vlgmr.msra.gmra.mrb[2].mxu1 %vm2977_vm11, %v2975_v34  ;;  %v3158_v17 = vmul.f32 %v3155_v37, %v4569_v29 }
 0x554   : > { %4183 = vmatpush1.bf16.msra.mxu1 %v4182_v1  ;;  %3054 = vmatprep.mubr.f32.mxu1 %v4394_v0 }
 0x555   : > { %v3255_v43 = vpop.permute.xlu1 %3254  ;;  %v3253_v44 = vpop.permute.xlu0 %3252  ;;  %v4184_v45 = vpack.c.bf16 %v3159_v38, %v3157_v15  ;;  %v4186_v53 = vpack.c.bf16 %v3158_v17, %v3156_v46 }
 0x556   : > { %v3258_v47 = vsel %vm657_vm4, %v3251_v35, %v3255_v43  ;;  %v3260_v58 = vsel %vm657_vm4, %v3255_v43, %v3251_v35  ;;  %v4142_v35 = vld [vmem:[%s5292_s8 + $0x28] sm:$0xff] }
 0x557   : > { %4134 = vmatmul.mubr.msk.f32.gmra.mrb[4].mxu1 %vm2977_vm11, %v2976_v40  ;;  %4185 = vmatprep.subr.bf16.mxu1 %v4184_v45  ;;  %v3263_v55 = vmul.f32 %v3258_v47, %v4578_v31 }
 0x558   : > { %3131 = vmatprep.mubr.f32.mxu1 %v4394_v0 }
 0x559   : > { %v3357_v50 = vpop.permute.xlu1 %3356  ;;  %v3257_v52 = vpop.permute.xlu0 %3256 }
 0x55a   : > { %v3259_v54 = vsel %vm657_vm4, %v3253_v44, %v3257_v52  ;;  %v3261_v29 = vsel %vm657_vm4, %v3257_v52, %v3253_v44 }
 0x55b   : > { %v3265_v56 = vmul.f32 %v3259_v54, %v4578_v31  ;;  %4135 = vmatmul.mubr.msk.f32.vlgmr.msra.gmra.mrb[2].mxu1 %vm2977_vm11, %v4131_v48  ;;  %v3264_v1 = vmul.f32 %v3261_v29, %v4594_v39  ;;  %v3262_v31 = vmul.f32 %v3260_v58, %v4594_v39  ;;  %v4146_v48 = vld [vmem:[%s5292_s8 + $0x38] sm:$0xff] }
 0x55c   : > { %4187 = vmatpush1.bf16.msra.mxu1 %v4186_v53  ;;  %3137 = vmatprep.mubr.f32.mxu1 %v4394_v0 }
 0x55d   : > { %v3361_v60 = vpop.permute.xlu1 %3360  ;;  %v3359_v62 = vpop.permute.xlu0 %3358  ;;  %v4188_v63 = vpack.c.bf16 %v3265_v56, %v3263_v55  ;;  %v4190_v10 = vpack.c.bf16 %v3264_v1, %v3262_v31  ;;  %v4149_v56 = vld [vmem:[%s5292_s8 + $0x50] sm:$0xff]  ;;  %v4150_v31 = vld [vmem:[%s5292_s8 + $0x58] sm:$0xff] }
 0x55e   : > { %v3364_v2 = vsel %vm763_vm5, %v3357_v50, %v3361_v60  ;;  %v3366_v19 = vsel %vm763_vm5, %v3361_v60, %v3357_v50 }
 0x55f   : > { %4136 = vmatmul.mubr.msk.f32.gmra.mrb[4].mxu1 %vm2977_vm11, %v4132_v57  ;;  %4189 = vmatprep.subr.bf16.mxu1 %v4188_v63  ;;  %v3369_v13 = vmul.f32 %v3364_v2, %v4601_v41 }
 0x560   : > { %3233 = vmatprep.mubr.f32.mxu1 %v4394_v0 }
 0x561   : > { %v3463_v4 = vpop.permute.xlu1 %3462  ;;  %v3363_v5 = vpop.permute.xlu0 %3362 }
 0x562   : > { %v3365_v12 = vsel %vm763_vm5, %v3359_v62, %v3363_v5  ;;  %v3367_v39 = vsel %vm763_vm5, %v3363_v5, %v3359_v62 }
 0x563   : > { %v3371_v16 = vmul.f32 %v3365_v12, %v4601_v41  ;;  %4139 = vmatmul.mubr.msk.f32.vlgmr.msra.gmra.mrb[2].mxu1 %vm2977_vm11, %v4137_v3  ;;  %v3370_v25 = vmul.f32 %v3367_v39, %v4617_v49  ;;  %v3368_v41 = vmul.f32 %v3366_v19, %v4617_v49 }
 0x564   : > { %4191 = vmatpush1.bf16.msra.mxu1 %v4190_v10  ;;  %3239 = vmatprep.mubr.f32.mxu1 %v4394_v0 }
 0x565   : > { %v3467_v20 = vpop.permute.xlu1 %3466  ;;  %v3465_v21 = vpop.permute.xlu0 %3464  ;;  %v4192_v23 = vpack.c.bf16 %v3371_v16, %v3369_v13  ;;  %v4194_v32 = vpack.c.bf16 %v3370_v25, %v3368_v41  ;;  %v4153_v13 = vld [vmem:[%s5292_s8 + $0x60] sm:$0xff] }
 0x566   : > { %v3472_v26 = vsel %vm869_vm6, %v3467_v20, %v3463_v4  ;;  %v3470_v36 = vsel %vm869_vm6, %v3463_v4, %v3467_v20 }
 0x567   : > { %4140 = vmatmul.mubr.msk.f32.gmra.mrb[4].mxu1 %vm2977_vm11, %v4138_v18  ;;  %4193 = vmatprep.subr.bf16.mxu1 %v4192_v23  ;;  %v3475_v8 = vmul.f32 %v3472_v26, %v4624_v51  ;;  %v4157_v26 = vld [vmem:[%s5292_s8 + $0x70] sm:$0xff] }
 0x568   : > { %3339 = vmatprep.mubr.f32.mxu1 %v4394_v0 }
 0x569   : > { %v3569_v28 = vpop.permute.xlu1 %3568  ;;  %v3469_v9 = vpop.permute.xlu0 %3468 }
 0x56a   : > { %v3473_v33 = vsel %vm869_vm6, %v3469_v9, %v3465_v21  ;;  %v3471_v49 = vsel %vm869_vm6, %v3465_v21, %v3469_v9  ;;  %v4154_v21 = vld [vmem:[%s5292_s8 + $0x68] sm:$0xff] }
 0x56b   : > { %v3477_v34 = vmul.f32 %v3473_v33, %v4624_v51  ;;  %4143 = vmatmul.mubr.msk.f32.vlgmr.msra.gmra.mrb[2].mxu1 %vm2977_vm11, %v4141_v27  ;;  %v3476_v38 = vmul.f32 %v3471_v49, %v4640_v59  ;;  %v3474_v51 = vmul.f32 %v3470_v36, %v4640_v59 }
 0x56c   : > { %4195 = vmatpush1.bf16.msra.mxu1 %v4194_v32  ;;  %3345 = vmatprep.mubr.f32.mxu1 %v4394_v0 }
 0x56d   : > { %v3573_v14 = vpop.permute.xlu1 %3572  ;;  %v3571_v15 = vpop.permute.xlu0 %3570  ;;  %v4196_v37 = vpack.c.bf16 %v3477_v34, %v3475_v8  ;;  %v4198_v45 = vpack.c.bf16 %v3476_v38, %v3474_v51 }
 0x56e   : > { %v3578_v40 = vsel %vm975_vm7, %v3573_v14, %v3569_v28  ;;  %v3576_v50 = vsel %vm975_vm7, %v3569_v28, %v3573_v14  ;;  %v4162_v28 = vld [vmem:[%s5292_s8 + $0x88] sm:$0xff] }
 0x56f   : > { %4144 = vmatmul.mubr.msk.f32.gmra.mrb[4].mxu1 %vm2977_vm11, %v4142_v35  ;;  %4197 = vmatprep.subr.bf16.mxu1 %v4196_v37  ;;  %v3581_v46 = vmul.f32 %v3578_v40, %v4647_v61 }
 0x570   : > { %3445 = vmatprep.mubr.f32.mxu1 %v4394_v0 }
 0x571   : > { %v3675_v43 = vpop.permute.xlu1 %3674  ;;  %v3575_v44 = vpop.permute.xlu0 %3574 }
 0x572   : > { %v3579_v17 = vsel %vm975_vm7, %v3575_v44, %v3571_v15  ;;  %v3577_v59 = vsel %vm975_vm7, %v3571_v15, %v3575_v44 }
 0x573   : > { %v3583_v47 = vmul.f32 %v3579_v17, %v4647_v61  ;;  %4147 = vmatmul.mubr.msk.f32.vlgmr.msra.gmra.mrb[2].mxu1 %vm2977_vm11, %v4145_v42  ;;  %v3582_v55 = vmul.f32 %v3577_v59, %v4663_v6  ;;  %v3580_v61 = vmul.f32 %v3576_v50, %v4663_v6 }
 0x574   : > { %4199 = vmatpush1.bf16.msra.mxu1 %v4198_v45  ;;  %3451 = vmatprep.mubr.f32.mxu1 %v4394_v0 }
 0x575   : > { %v3679_v52 = vpop.permute.xlu1 %3678  ;;  %v3677_v53 = vpop.permute.xlu0 %3676  ;;  %v4200_v54 = vpack.c.bf16 %v3583_v47, %v3581_v46  ;;  %v4202_v60 = vpack.c.bf16 %v3582_v55, %v3580_v61 }
 0x576   : > { %v3684_v29 = vsel %vm1081_vm8, %v3679_v52, %v3675_v43  ;;  %v3682_v2 = vsel %vm1081_vm8, %v3675_v43, %v3679_v52 }
 0x577   : > { %4148 = vmatmul.mubr.msk.f32.gmra.mrb[4].mxu1 %vm2977_vm11, %v4146_v48  ;;  %4201 = vmatprep.subr.bf16.mxu1 %v4200_v54  ;;  %v3687_v63 = vmul.f32 %v3684_v29, %v4670_v11  ;;  %v3968_v54 = vld [vmem:[%s4848_s25 + $0x8] sm:$0xff] (%p4484_p4) }
 0x578   : > { %3551 = vmatprep.mubr.f32.mxu1 %v4394_v0  ;;  %3969 = vst [vmem:[%s3953_s28 + $0x8] sm:$0xff] (%p4484_p4), %v3968_v54 }
 0x579   : > { %v3781_v57 = vpop.permute.xlu1 %3780  ;;  %v3681_v58 = vpop.permute.xlu0 %3680 }
 0x57a   : > { %v3685_v62 = vsel %vm1081_vm8, %v3681_v58, %v3677_v53  ;;  %v3683_v6 = vsel %vm1081_vm8, %v3677_v53, %v3681_v58  ;;  %v3966_v53 = vld [vmem:[%s4848_s25] sm:$0xff] (%p4484_p4) }
 0x57b   : > { %v3689_v1 = vmul.f32 %v3685_v62, %v4670_v11  ;;  %4151 = vmatmul.mubr.msk.f32.vlgmr.msra.gmra.mrb[2].mxu1 %vm2977_vm11, %v4149_v56  ;;  %v3688_v10 = vmul.f32 %v3683_v6, %v4686_v22  ;;  %v3686_v11 = vmul.f32 %v3682_v2, %v4686_v22  ;;  %3967 = vst [vmem:[%s3953_s28] sm:$0xff] (%p4484_p4), %v3966_v53 }
 0x57c   : > { %4203 = vmatpush1.bf16.msra.mxu1 %v4202_v60  ;;  %3557 = vmatprep.mubr.f32.mxu1 %v4394_v0 }
 0x57d   : > { %v3785_v3 = vpop.permute.xlu1 %3784  ;;  %v3783_v4 = vpop.permute.xlu0 %3782  ;;  %v4204_v5 = vpack.c.bf16 %v3689_v1, %v3687_v63  ;;  %v4206_v16 = vpack.c.bf16 %v3688_v10, %v3686_v11 }
 0x57e   : > { %v3790_v12 = vsel %vm1187_vm9, %v3785_v3, %v3781_v57  ;;  %v3788_v23 = vsel %vm1187_vm9, %v3781_v57, %v3785_v3 }
 0x57f   : > { %4152 = vmatmul.mubr.msk.f32.gmra.mrb[4].mxu1 %vm2977_vm11, %v4150_v31  ;;  %4205 = vmatprep.subr.bf16.mxu1 %v4204_v5  ;;  %v3793_v19 = vmul.f32 %v3790_v12, %v4693_v24 }
 0x580   : > { %3657 = vmatprep.mubr.f32.mxu1 %v4394_v0 }
 0x581   : > { %v3787_v39 = vpop.permute.xlu0 %3786 }
 0x582   : > { %v3791_v18 = vsel %vm1187_vm9, %v3787_v39, %v3783_v4  ;;  %v3789_v20 = vsel %vm1187_vm9, %v3783_v4, %v3787_v39 }
 0x583   : > { %v3795_v22 = vmul.f32 %v3791_v18, %v4693_v24  ;;  %4155 = vmatmul.mubr.msk.f32.vlgmr.msra.gmra.mrb[2].mxu1 %vm2977_vm11, %v4153_v13  ;;  %v3794_v41 = vmul.f32 %v3789_v20, %v4705_v30  ;;  %v3792_v24 = vmul.f32 %v3788_v23, %v4705_v30  ;;  %v4161_v30 = vld [vmem:[%s5292_s8 + $0x80] sm:$0xff] }
 0x584   : > { %4207 = vmatpush1.bf16.msra.mxu1 %v4206_v16  ;;  %3663 = vmatprep.mubr.f32.mxu1 %v4394_v0 }
 0x585   : > { %v4208_v25 = vpack.c.bf16 %v3795_v22, %v3793_v19  ;;  %v4210_v27 = vpack.c.bf16 %v3794_v41, %v3792_v24 }
 0x587   : > { %4156 = vmatmul.mubr.msk.f32.gmra.mrb[4].mxu1 %vm2977_vm11, %v4154_v21  ;;  %4209 = vmatprep.subr.bf16.mxu1 %v4208_v25 }
 0x588   : > { %3763 = vmatprep.mubr.f32.mxu1 %v4394_v0 }
 0x58b   : > { %4159 = vmatmul.mubr.msk.f32.vlgmr.msra.gmra.mrb[2].mxu1 %vm2977_vm11, %v4157_v26 }
 0x58c   : > { %4211 = vmatpush1.bf16.msra.mxu1 %v4210_v27  ;;  %3769 = vmatprep.mubr.f32.mxu1 %v4394_v0 }
 0x58e   : > { %v3891_v9 = vpop.permute.xlu1 %3890 }
 0x58f   : > { %4160 = vmatmul.mubr.msk.f32.gmra.mrb[4].mxu1 %vm2977_vm11, %v4158_v7 }
 0x590   : > { %3869 = vmatprep.mubr.f32.mxu1 %v4394_v0 }
 0x592   : > { %v3896_v35 = vpop.permute.xlu0 %3895 }
 0x593   : > { %4163 = vmatmul.mubr.msk.f32.vlgmr.msra.gmra.mrb[2].mxu1 %vm2977_vm11, %v4161_v30 }
 0x594   : > { %3875 = vmatprep.mubr.f32.mxu1 %v4394_v0 }
 0x597   : > { %4164 = vmatmul.mubr.msk.f32.gmra.mrb[4].mxu1 %vm2977_vm11, %v4162_v28 }
 0x666   : > { %v3871_v32 = vpop.f32.mrb[2].mxu1 }
 0x667   : > { %v3898_v33 = vadd.f32 %v3891_v9, %v3871_v32  ;;  %v3873_v8 = vpop.f32.mrb[3].mxu1 }
 0x668   : > { %v3899_v49 = vadd.f32 %v3891_v9, %v3873_v8 }
 0x669   : > { %v4167_v34 = vmul.f32 -1.442695, %v3898_v33 }
 0x66a   : > { %v4168_v36 = vmul.f32 -1.442695, %v3899_v49  ;;  %v3877_v14 = vpop.f32.mrb[4].mxu1 }
 0x66b   : > { %4354 = vpow2.f32 %v4167_v34  ;;  %v3900_v15 = vadd.f32 %v3896_v35, %v3877_v14  ;;  %v3879_v37 = vpop.f32.mrb[5].mxu1 }
 0x66c   : > { %4356 = vpow2.f32 %v4168_v36  ;;  %v3901_v0 = vadd.f32 %v3896_v35, %v3879_v37 }
 0x66d   : > { %v4169_v38 = vmul.f32 -1.442695, %v3900_v15 }
 0x66e   : > { %v4170_v51 = vmul.f32 -1.442695, %v3901_v0 }
 0x66f   : > { %4358 = vpow2.f32 %v4169_v38 }
 0x670   : > { %4360 = vpow2.f32 %v4170_v51 }
 0x675   : > { %v4355_v40 = vpop.eup %4354 }
 0x676   : > { %v4357_v42 = vpop.eup %4356  ;;  %v3926_v43 = vadd.f32 1.0, %v4355_v40 }
 0x677   : > { %v3927_v44 = vadd.f32 1.0, %v4357_v42 }
 0x678   : > { %4362 = vrcp.f32 %v3926_v43 }
 0x679   : > { %v4359_v45 = vpop.eup %4358  ;;  %4364 = vrcp.f32 %v3927_v44 }
 0x67a   : > { %v4361_v17 = vpop.eup %4360  ;;  %v3928_v46 = vadd.f32 1.0, %v4359_v45 }
 0x67b   : > { %v3929_v59 = vadd.f32 1.0, %v4361_v17 }
 0x67c   : > { %4366 = vrcp.f32 %v3928_v46 }
 0x67d   : > { %4368 = vrcp.f32 %v3929_v59 }
 0x682   : > { %v4363_v47 = vpop.eup %4362  ;;  %3950 = sbr.rel (!%p4484_p4) target bundleno = 1681 (0x691), region = 64 }
 0x683   : > { %v4365_v48 = vpop.eup %4364  ;;  %3940 = vst [vmem:[%s4848_s25 + $0x10] sm:$0xff] %v4363_v47 }
 0x684   : > { %3941 = vst [vmem:[%s4848_s25 + $0x18] sm:$0xff] %v4365_v48 }
 0x686   : > { %v4367_v50 = vpop.eup %4366 }
 0x687   : > { %v4369_v52 = vpop.eup %4368  ;;  %3942 = vst [vmem:[%s4848_s25 + $0x20] sm:$0xff] %v4367_v50 }
 0x688   : > { %3943 = vst [vmem:[%s4848_s25 + $0x28] sm:$0xff] %v4369_v52 }
 0x68a   : > { %v3970_v55 = vld [vmem:[%s4848_s25 + $0x10] sm:$0xff] }
 0x68b   : > { %v3972_v61 = vld [vmem:[%s4848_s25 + $0x18] sm:$0xff]  ;;  %3971 = vst [vmem:[%s3953_s28 + $0x20] sm:$0xff] %v3970_v55 }
 0x68c   : > { %3973 = vst [vmem:[%s3953_s28 + $0x28] sm:$0xff] %v3972_v61 }
 0x68e   : > { %v3974_v29 = vld [vmem:[%s4848_s25 + $0x20] sm:$0xff] }
 0x68f   : > { %v3976_v56 = vld [vmem:[%s4848_s25 + $0x28] sm:$0xff]  ;;  %3975 = vst [vmem:[%s3953_s28 + $0x40] sm:$0xff] %v3974_v29 }
 0x690   : > { %3977 = vst [vmem:[%s3953_s28 + $0x48] sm:$0xff] %v3976_v56 }
 0x691 PF: > { %p17_p8 = scmp.ge.s32.totalorder %s4474_s17, 4   ;;  %s5296_s13 = smov %s4388_s14 }
 0x692   : > { %s5297_s14 = smov %s4482_s20  ;;  %s5298_s15 = smov %s4474_s17 }
 0x693   :  { %19 = sbr.rel (!%p17_p8) target bundleno = 2 (0x2), region = 152 }

</bundles_post_ra>
